<compile_context>
chip_gen: v7x
topology: tpu7x:2x2x1
jax: 0.10.0
libtpu: 0.0.40
codegen_flags: <defaults>
</compile_context>

<pallas_src>
import functools

import jax
import jax.numpy as jnp
from jax.experimental import pallas as pl
from jax.experimental.pallas import tpu as pltpu

_SUBLANE = 8


def _make_kernel(num_layers, seq_len, batch_p, hidden_size):
    T, BP, H = seq_len, batch_p, hidden_size

    def kernel(*refs):
        x_ref = refs[0]                                   # (T*BP, V), time-major, batch padded
        layer_refs = refs[1:1 + 3 * num_layers]           # (w_ih_T, w_hh_T, bias) per layer
        fcw_ref = refs[1 + 3 * num_layers]                 # (H, O)  (already transposed)
        fcb_ref = refs[2 + 3 * num_layers]                 # (1, O)
        out_ref, hn_ref, cn_ref = refs[3 + 3 * num_layers:3 + 3 * num_layers + 3]
        xproj_scr = refs[3 + 3 * num_layers + 3]           # VMEM (T, BP, 4H) f32
        hout_scr = refs[3 + 3 * num_layers + 4]            # VMEM (T, BP, H)  f32

        h_top = None
        for l in range(num_layers):
            # Hoisted per-layer loads (never re-issued inside the time loop).
            w_ih = layer_refs[3 * l][...]                              # (in_dim, 4H) [i,f,o,g]
            w_hh_bf = layer_refs[3 * l + 1][...].astype(jnp.bfloat16)  # (H, 4H) bf16, stationary
            bias = layer_refs[3 * l + 2][...]                          # (1, 4H) = b_ih + b_hh

            if l == 0:
                layer_in = x_ref[...]                       # (T*BP, V)
            else:
                layer_in = hout_scr[...].reshape(T * BP, H)  # previous layer's outputs

            # Batched input projection for ALL timesteps of this layer (one MXU op),
            # staged into VMEM scratch so the serial loop only does leading-axis reads.
            xproj = jnp.dot(layer_in, w_ih,
                            preferred_element_type=jnp.float32) + bias  # (T*BP, 4H)
            xproj_scr[...] = xproj.reshape(T, BP, 4 * H)

            def step(t, carry):
                h, c = carry
                # Recurrent matmul in bf16 operands / f32 accumulation (critical path).
                gates = xproj_scr[t] + jnp.dot(
                    h.astype(jnp.bfloat16), w_hh_bf,
                    preferred_element_type=jnp.float32)     # (BP, 4H)
                # Full-width EUP passes; gate order is [i | f | o | g].
                sig = jax.nn.sigmoid(gates)
                tnh = jnp.tanh(gates)
                i_g = sig[:, :H]
                f_g = sig[:, H:2 * H]
                o_g = sig[:, 2 * H:3 * H]
                g_g = tnh[:, 3 * H:]
                c_n = f_g * c + i_g * g_g
                h_n = o_g * jnp.tanh(c_n)
                hout_scr[t] = h_n                           # vst slot; bounds live range
                return h_n, c_n
                # TODO(synk): on v7x, keep w_hh stationary via pltpu.matmul_push_rhs /
                # matmul_acc_lhs / matmul_pop (MRB) to drop per-step weight pushes.

            h0 = jnp.zeros((BP, H), jnp.float32)
            c0 = jnp.zeros((BP, H), jnp.float32)
            h_fin, c_fin = jax.lax.fori_loop(0, T, step, (h0, c0), unroll=True)

            hn_ref[l] = h_fin
            cn_ref[l] = c_fin
            h_top = h_fin
            # TODO(synk): inter-layer dropout of nn.LSTM is eval-mode identity here.

        # Final Linear + Softmax(dim=1); self.dropout is identity in eval.
        logits = jnp.dot(h_top, fcw_ref[...],
                         preferred_element_type=jnp.float32) + fcb_ref[...]
        m = jnp.max(logits, axis=1, keepdims=True)
        e = jnp.exp(logits - m)
        denom = jnp.sum(e, axis=1, keepdims=True)
        out_ref[...] = e * pl.reciprocal(denom, approx=True)
        # TODO(synk): at real vocab sizes, tile the fc matmul + softmax over O with a
        # grid (lane-dense output slabs, two-pass softmax) and keep fc_w / w_ih in HBM.

    return kernel


def text_generation_forward(x, params, num_layers, hidden_size, output_size):
    """Mirrors TextGenerationModel.forward(x, hidden=None).

    params (all pre-transposed / gate-reordered to [i,f,o,g]):
      per layer l: 'w_ih_T_l{l}' (in,4H), 'w_hh_T_l{l}' (H,4H), 'b_l{l}' (1,4H);
      plus 'fc_w_T' (H,O), 'fc_b' (1,O).
    Returns (probs, (h_n, c_n))."""
    B, T, V = x.shape
    H, O = hidden_size, output_size
    BP = max(_SUBLANE, ((B + _SUBLANE - 1) // _SUBLANE) * _SUBLANE)

    # Wrapper-side layout plumbing: pad batch to a sublane multiple, go time-major
    # and flatten so layer 0 is a single (T*BP, V) x (V, 4H) matmul.
    xp = jnp.pad(x, ((0, BP - B), (0, 0), (0, 0)))
    x2d = jnp.transpose(xp, (1, 0, 2)).reshape(T * BP, V)

    inputs = [x2d]
    for l in range(num_layers):
        inputs += [params[f"w_ih_T_l{l}"], params[f"w_hh_T_l{l}"], params[f"b_l{l}"]]
    inputs += [params["fc_w_T"], params["fc_b"]]

    kernel = _make_kernel(num_layers, T, BP, H)

    out_shapes = (
        jax.ShapeDtypeStruct((BP, O), jnp.float32),                # softmax probs (padded B)
        jax.ShapeDtypeStruct((num_layers, BP, H), jnp.float32),    # h_n (padded B)
        jax.ShapeDtypeStruct((num_layers, BP, H), jnp.float32),    # c_n (padded B)
    )

    scratch_shapes = [
        pltpu.VMEM((T, BP, 4 * H), jnp.float32),   # staged input projections
        pltpu.VMEM((T, BP, H), jnp.float32),       # per-layer hidden outputs
    ]

    # Size scoped VMEM from the actual footprint (cap at 64 MiB so v7x is safe).
    footprint_bytes = 4 * (
        x2d.size + sum(int(p.size) for p in inputs[1:])
        + BP * O + 2 * num_layers * BP * H
        + T * BP * 4 * H + T * BP * H)
    vmem_limit = int(min(64 << 20, max(32 << 20, 2 * footprint_bytes)))

    vmem_spec = pl.BlockSpec(memory_space=pltpu.MemorySpace.VMEM)
    probs, h_n, c_n = pl.pallas_call(
        kernel,
        out_shape=out_shapes,
        in_specs=[vmem_spec] * len(inputs),
        out_specs=(vmem_spec, vmem_spec, vmem_spec),
        scratch_shapes=scratch_shapes,
        compiler_params=pltpu.CompilerParams(vmem_limit_bytes=vmem_limit),
    )(*inputs)
    # Drop the padded batch rows.
    return probs[:B], (h_n[:, :B], c_n[:, :B])
    # TODO(synk): at real vocab sizes, pass token indices via
    # PrefetchScalarGridSpec(num_scalar_prefetch=1) and gather w_ih rows (keep w_ih
    # in HBM, memory_space=pl.ANY) instead of the one-hot matmul for layer 0.
    # TODO(synk): at B >= 16 add a batch grid axis with dimension_semantics=("parallel",)
    # so the two v7x TensorCores run independent recurrences.


def _gate_perm(hidden_size):
    """PyTorch LSTM gate order [i, f, g, o] -> kernel order [i, f, o, g]."""
    H = hidden_size
    return jnp.concatenate([
        jnp.arange(0, H), jnp.arange(H, 2 * H),
        jnp.arange(3 * H, 4 * H), jnp.arange(2 * H, 3 * H)])


def init_params(key, input_size, hidden_size, num_layers, output_size):
    """PyTorch-style init U(-1/sqrt(H), 1/sqrt(H)).

    Returns (kernel_params, raw_params): kernel_params transposed / gate-reordered
    for the Pallas kernel; raw_params keep PyTorch layout for the reference check."""
    H = hidden_size
    k = 1.0 / jnp.sqrt(H)
    perm = _gate_perm(H)
    params, raw = {}, {"layers": []}
    for l in range(num_layers):
        in_dim = input_size if l == 0 else H
        key, k1, k2, k3, k4 = jax.random.split(key, 5)
        w_ih = jax.random.uniform(k1, (4 * H, in_dim), jnp.float32, -k, k)   # [i,f,g,o] rows
        w_hh = jax.random.uniform(k2, (4 * H, H), jnp.float32, -k, k)
        b_ih = jax.random.uniform(k3, (4 * H,), jnp.float32, -k, k)
        b_hh = jax.random.uniform(k4, (4 * H,), jnp.float32, -k, k)
        raw["layers"].append((w_ih, w_hh, b_ih, b_hh))
        params[f"w_ih_T_l{l}"] = w_ih[perm].T                       # (in_dim, 4H)
        params[f"w_hh_T_l{l}"] = w_hh[perm].T                       # (H, 4H)
        params[f"b_l{l}"] = (b_ih + b_hh)[perm].reshape(1, -1)      # (1, 4H)
    key, k5, k6 = jax.random.split(key, 3)
    fc_w = jax.random.uniform(k5, (output_size, H), jnp.float32, -k, k)
    fc_b = jax.random.uniform(k6, (output_size,), jnp.float32, -k, k)
    raw["fc_w"], raw["fc_b"] = fc_w, fc_b
    params["fc_w_T"] = fc_w.T                                       # (H, O)
    params["fc_b"] = fc_b.reshape(1, -1)                            # (1, O)
    return params, raw


def reference_forward(x, raw, num_layers, hidden_size):
    """Pure-JAX f32 reference in exact PyTorch layout / gate order [i,f,g,o]."""
    B, T, _ = x.shape
    H = hidden_size
    hs = [jnp.zeros((B, H), jnp.float32) for _ in range(num_layers)]
    cs = [jnp.zeros((B, H), jnp.float32) for _ in range(num_layers)]
    for t in range(T):
        inp = x[:, t, :]
        for l in range(num_layers):
            w_ih, w_hh, b_ih, b_hh = raw["layers"][l]
            gates = inp @ w_ih.T + hs[l] @ w_hh.T + b_ih + b_hh
            i = jax.nn.sigmoid(gates[:, :H])
            f = jax.nn.sigmoid(gates[:, H:2 * H])
            g = jnp.tanh(gates[:, 2 * H:3 * H])
            o = jax.nn.sigmoid(gates[:, 3 * H:])
            cs[l] = f * cs[l] + i * g
            hs[l] = o * jnp.tanh(cs[l])
            inp = hs[l]
    logits = hs[-1] @ raw["fc_w"].T + raw["fc_b"]
    probs = jax.nn.softmax(logits, axis=1)
    return probs, jnp.stack(hs), jnp.stack(cs)


if __name__ == "__main__":
    vocab_size = 32       # input_size == output_size (vocab)
    hidden_size = 32
    num_layers = 2
    batch = 2
    seq = 8

    key = jax.random.PRNGKey(0)
    key, kx = jax.random.split(key)
    idx = jax.random.randint(kx, (batch, seq), 0, vocab_size)
    x = jax.nn.one_hot(idx, vocab_size, dtype=jnp.float32)    # (B, T, V) one-hot chars

    params, raw = init_params(key, vocab_size, hidden_size, num_layers, vocab_size)

    fwd = jax.jit(functools.partial(
        text_generation_forward,
        num_layers=num_layers, hidden_size=hidden_size, output_size=vocab_size))
    probs, (h_n, c_n) = fwd(x, params)
    jax.block_until_ready((probs, h_n, c_n))

    assert probs.shape == (batch, vocab_size)
    assert h_n.shape == (num_layers, batch, hidden_size)
    assert c_n.shape == (num_layers, batch, hidden_size)
    # approx reciprocal in the softmax epilogue -> slightly looser sum tolerance.
    assert jnp.allclose(jnp.sum(probs, axis=1), 1.0, atol=1e-2)

    # Verify against a pure-JAX PyTorch-semantics f32 reference. Tolerances are
    # loosened vs. the pure-f32 kernel because the recurrent matmul now runs with
    # bf16 operands (f32 accumulation) and the softmax uses approx reciprocal.
    ref_probs, ref_h, ref_c = reference_forward(x, raw, num_layers, hidden_size)
    assert jnp.allclose(probs, ref_probs, atol=2e-2, rtol=5e-2)
    assert jnp.allclose(h_n, ref_h, atol=2e-2, rtol=5e-2)
    assert jnp.allclose(c_n, ref_c, atol=2e-2, rtol=5e-2)

    print("KERNEL_OK")
</pallas_src>

<mosaic_0001>
module attributes {stable_mosaic.version = 11 : i64} {
  func.func @kernel(%arg0: memref<64x32xf32, #tpu.memory_space<vmem>>, %arg1: memref<32x128xf32, #tpu.memory_space<vmem>>, %arg2: memref<32x128xf32, #tpu.memory_space<vmem>>, %arg3: memref<1x128xf32, #tpu.memory_space<vmem>>, %arg4: memref<32x128xf32, #tpu.memory_space<vmem>>, %arg5: memref<32x128xf32, #tpu.memory_space<vmem>>, %arg6: memref<1x128xf32, #tpu.memory_space<vmem>>, %arg7: memref<32x32xf32, #tpu.memory_space<vmem>>, %arg8: memref<1x32xf32, #tpu.memory_space<vmem>>, %arg9: memref<8x32xf32, #tpu.memory_space<vmem>>, %arg10: memref<2x8x32xf32, #tpu.memory_space<vmem>>, %arg11: memref<2x8x32xf32, #tpu.memory_space<vmem>>, %arg12: memref<8x8x128xf32, #tpu.memory_space<vmem>>, %arg13: memref<8x8x32xf32, #tpu.memory_space<vmem>>) attributes {dimension_semantics = [], scalar_prefetch = 0 : i64, scratch_operands = 2 : i64, tpu.core_type = #tpu.core_type<tc>} {
    %c0 = arith.constant 0 : index
    %c0_0 = arith.constant 0 : index
    %0 = vector.load %arg1[%c0, %c0_0] : memref<32x128xf32, #tpu.memory_space<vmem>>, vector<32x128xf32>
    %c0_1 = arith.constant 0 : index
    %c0_2 = arith.constant 0 : index
    %1 = vector.load %arg2[%c0_1, %c0_2] : memref<32x128xf32, #tpu.memory_space<vmem>>, vector<32x128xf32>
    %2 = arith.truncf %1 : vector<32x128xf32> to vector<32x128xbf16>
    %c0_3 = arith.constant 0 : index
    %c0_4 = arith.constant 0 : index
    %3 = vector.load %arg3[%c0_3, %c0_4] : memref<1x128xf32, #tpu.memory_space<vmem>>, vector<1x128xf32>
    %c0_5 = arith.constant 0 : index
    %c0_6 = arith.constant 0 : index
    %4 = vector.load %arg0[%c0_5, %c0_6] : memref<64x32xf32, #tpu.memory_space<vmem>>, vector<64x32xf32>
    %cst = arith.constant dense<0.000000e+00> : vector<64x128xf32>
    %5 = tpu.matmul %4, %0, %cst {dimension_numbers = #tpu.dot_dimension_numbers<[1], [0], [0], [1], [0, 0, 1, 1], [], []>} : vector<64x32xf32>, vector<32x128xf32>, vector<64x128xf32> -> vector<64x128xf32>
    %6 = vector.broadcast %3 : vector<1x128xf32> to vector<64x128xf32>
    %7 = arith.addf %5, %6 : vector<64x128xf32>
    %8 = vector.shape_cast %7 : vector<64x128xf32> to vector<8x8x128xf32>
    %c0_7 = arith.constant 0 : index
    %c0_8 = arith.constant 0 : index
    %c0_9 = arith.constant 0 : index
    %9 = vector.load %arg12[%c0_7, %c0_8, %c0_9] : memref<8x8x128xf32, #tpu.memory_space<vmem>>, vector<8x8x128xf32>
    tpu.vector_store %arg12[%c0_7, %c0_8, %c0_9], %8 {strides = array<i32>} : memref<8x8x128xf32, #tpu.memory_space<vmem>>, vector<8x8x128xf32>,
    %cst_10 = arith.constant 0.000000e+00 : f32
    %10 = vector.broadcast %cst_10 : f32 to vector<8x32xf32>
    %cst_11 = arith.constant 0.000000e+00 : f32
    %11 = vector.broadcast %cst_11 : f32 to vector<8x32xf32>
    %c0_i32 = arith.constant 0 : i32
    %12 = arith.index_cast %c0_i32 : i32 to index
    %c0_12 = arith.constant 0 : index
    %c0_13 = arith.constant 0 : index
    %13 = vector.load %arg12[%12, %c0_12, %c0_13] : memref<8x8x128xf32, #tpu.memory_space<vmem>>, vector<1x8x128xf32>
    %14 = vector.shape_cast %13 : vector<1x8x128xf32> to vector<8x128xf32>
    %15 = arith.truncf %10 : vector<8x32xf32> to vector<8x32xbf16>
    %cst_14 = arith.constant dense<0.000000e+00> : vector<8x128xf32>
    %16 = tpu.matmul %15, %2, %cst_14 {dimension_numbers = #tpu.dot_dimension_numbers<[1], [0], [0], [1], [0, 0, 1, 1], [], []>} : vector<8x32xbf16>, vector<32x128xbf16>, vector<8x128xf32> -> vector<8x128xf32>
    %17 = arith.addf %14, %16 : vector<8x128xf32>
    %18 = arith.negf %17 : vector<8x128xf32>
    %19 = math.exp %18 : vector<8x128xf32>
    %cst_15 = arith.constant 1.000000e+00 : f32
    %20 = vector.broadcast %cst_15 : f32 to vector<8x128xf32>
    %21 = arith.addf %20, %19 : vector<8x128xf32>
    %22 = arith.divf %20, %21 : vector<8x128xf32>
    %23 = math.tanh %17 : vector<8x128xf32>
    %24 = vector.extract_strided_slice %22 {offsets = [0, 0], sizes = [8, 32], strides = [1, 1]} : vector<8x128xf32> to vector<8x32xf32>
    %25 = vector.extract_strided_slice %22 {offsets = [0, 32], sizes = [8, 32], strides = [1, 1]} : vector<8x128xf32> to vector<8x32xf32>
    %26 = vector.extract_strided_slice %22 {offsets = [0, 64], sizes = [8, 32], strides = [1, 1]} : vector<8x128xf32> to vector<8x32xf32>
    %27 = vector.extract_strided_slice %23 {offsets = [0, 96], sizes = [8, 32], strides = [1, 1]} : vector<8x128xf32> to vector<8x32xf32>
    %28 = arith.mulf %25, %11 : vector<8x32xf32>
    %29 = arith.mulf %24, %27 : vector<8x32xf32>
    %30 = arith.addf %28, %29 : vector<8x32xf32>
    %31 = math.tanh %30 : vector<8x32xf32>
    %32 = arith.mulf %26, %31 : vector<8x32xf32>
    %33 = arith.index_cast %c0_i32 : i32 to index
    %c0_16 = arith.constant 0 : index
    %c0_17 = arith.constant 0 : index
    %34 = vector.load %arg13[%33, %c0_16, %c0_17] : memref<8x8x32xf32, #tpu.memory_space<vmem>>, vector<1x8x32xf32>
    %35 = vector.shape_cast %34 : vector<1x8x32xf32> to vector<8x32xf32>
    %36 = vector.shape_cast %32 : vector<8x32xf32> to vector<1x8x32xf32>
    tpu.vector_store %arg13[%33, %c0_16, %c0_17], %36 {strides = array<i32>} : memref<8x8x32xf32, #tpu.memory_space<vmem>>, vector<1x8x32xf32>,
    %c1_i32 = arith.constant 1 : i32
    %37 = arith.index_cast %c1_i32 : i32 to index
    %c0_18 = arith.constant 0 : index
    %c0_19 = arith.constant 0 : index
    %38 = vector.load %arg12[%37, %c0_18, %c0_19] : memref<8x8x128xf32, #tpu.memory_space<vmem>>, vector<1x8x128xf32>
    %39 = vector.shape_cast %38 : vector<1x8x128xf32> to vector<8x128xf32>
    %40 = arith.truncf %32 : vector<8x32xf32> to vector<8x32xbf16>
    %cst_20 = arith.constant dense<0.000000e+00> : vector<8x128xf32>
    %41 = tpu.matmul %40, %2, %cst_20 {dimension_numbers = #tpu.dot_dimension_numbers<[1], [0], [0], [1], [0, 0, 1, 1], [], []>} : vector<8x32xbf16>, vector<32x128xbf16>, vector<8x128xf32> -> vector<8x128xf32>
    %42 = arith.addf %39, %41 : vector<8x128xf32>
    %43 = arith.negf %42 : vector<8x128xf32>
    %44 = math.exp %43 : vector<8x128xf32>
    %cst_21 = arith.constant 1.000000e+00 : f32
    %45 = vector.broadcast %cst_21 : f32 to vector<8x128xf32>
    %46 = arith.addf %45, %44 : vector<8x128xf32>
    %47 = arith.divf %45, %46 : vector<8x128xf32>
    %48 = math.tanh %42 : vector<8x128xf32>
    %49 = vector.extract_strided_slice %47 {offsets = [0, 0], sizes = [8, 32], strides = [1, 1]} : vector<8x128xf32> to vector<8x32xf32>
    %50 = vector.extract_strided_slice %47 {offsets = [0, 32], sizes = [8, 32], strides = [1, 1]} : vector<8x128xf32> to vector<8x32xf32>
    %51 = vector.extract_strided_slice %47 {offsets = [0, 64], sizes = [8, 32], strides = [1, 1]} : vector<8x128xf32> to vector<8x32xf32>
    %52 = vector.extract_strided_slice %48 {offsets = [0, 96], sizes = [8, 32], strides = [1, 1]} : vector<8x128xf32> to vector<8x32xf32>
    %53 = arith.mulf %50, %30 : vector<8x32xf32>
    %54 = arith.mulf %49, %52 : vector<8x32xf32>
    %55 = arith.addf %53, %54 : vector<8x32xf32>
    %56 = math.tanh %55 : vector<8x32xf32>
    %57 = arith.mulf %51, %56 : vector<8x32xf32>
    %58 = arith.index_cast %c1_i32 : i32 to index
    %c0_22 = arith.constant 0 : index
    %c0_23 = arith.constant 0 : index
    %59 = vector.load %arg13[%58, %c0_22, %c0_23] : memref<8x8x32xf32, #tpu.memory_space<vmem>>, vector<1x8x32xf32>
    %60 = vector.shape_cast %59 : vector<1x8x32xf32> to vector<8x32xf32>
    %61 = vector.shape_cast %57 : vector<8x32xf32> to vector<1x8x32xf32>
    tpu.vector_store %arg13[%58, %c0_22, %c0_23], %61 {strides = array<i32>} : memref<8x8x32xf32, #tpu.memory_space<vmem>>, vector<1x8x32xf32>,
    %c2_i32 = arith.constant 2 : i32
    %62 = arith.index_cast %c2_i32 : i32 to index
    %c0_24 = arith.constant 0 : index
    %c0_25 = arith.constant 0 : index
    %63 = vector.load %arg12[%62, %c0_24, %c0_25] : memref<8x8x128xf32, #tpu.memory_space<vmem>>, vector<1x8x128xf32>
    %64 = vector.shape_cast %63 : vector<1x8x128xf32> to vector<8x128xf32>
    %65 = arith.truncf %57 : vector<8x32xf32> to vector<8x32xbf16>
    %cst_26 = arith.constant dense<0.000000e+00> : vector<8x128xf32>
    %66 = tpu.matmul %65, %2, %cst_26 {dimension_numbers = #tpu.dot_dimension_numbers<[1], [0], [0], [1], [0, 0, 1, 1], [], []>} : vector<8x32xbf16>, vector<32x128xbf16>, vector<8x128xf32> -> vector<8x128xf32>
    %67 = arith.addf %64, %66 : vector<8x128xf32>
    %68 = arith.negf %67 : vector<8x128xf32>
    %69 = math.exp %68 : vector<8x128xf32>
    %cst_27 = arith.constant 1.000000e+00 : f32
    %70 = vector.broadcast %cst_27 : f32 to vector<8x128xf32>
    %71 = arith.addf %70, %69 : vector<8x128xf32>
    %72 = arith.divf %70, %71 : vector<8x128xf32>
    %73 = math.tanh %67 : vector<8x128xf32>
    %74 = vector.extract_strided_slice %72 {offsets = [0, 0], sizes = [8, 32], strides = [1, 1]} : vector<8x128xf32> to vector<8x32xf32>
    %75 = vector.extract_strided_slice %72 {offsets = [0, 32], sizes = [8, 32], strides = [1, 1]} : vector<8x128xf32> to vector<8x32xf32>
    %76 = vector.extract_strided_slice %72 {offsets = [0, 64], sizes = [8, 32], strides = [1, 1]} : vector<8x128xf32> to vector<8x32xf32>
    %77 = vector.extract_strided_slice %73 {offsets = [0, 96], sizes = [8, 32], strides = [1, 1]} : vector<8x128xf32> to vector<8x32xf32>
    %78 = arith.mulf %75, %55 : vector<8x32xf32>
    %79 = arith.mulf %74, %77 : vector<8x32xf32>
    %80 = arith.addf %78, %79 : vector<8x32xf32>
    %81 = math.tanh %80 : vector<8x32xf32>
    %82 = arith.mulf %76, %81 : vector<8x32xf32>
    %83 = arith.index_cast %c2_i32 : i32 to index
    %c0_28 = arith.constant 0 : index
    %c0_29 = arith.constant 0 : index
    %84 = vector.load %arg13[%83, %c0_28, %c0_29] : memref<8x8x32xf32, #tpu.memory_space<vmem>>, vector<1x8x32xf32>
    %85 = vector.shape_cast %84 : vector<1x8x32xf32> to vector<8x32xf32>
    %86 = vector.shape_cast %82 : vector<8x32xf32> to vector<1x8x32xf32>
    tpu.vector_store %arg13[%83, %c0_28, %c0_29], %86 {strides = array<i32>} : memref<8x8x32xf32, #tpu.memory_space<vmem>>, vector<1x8x32xf32>,
    %c3_i32 = arith.constant 3 : i32
    %87 = arith.index_cast %c3_i32 : i32 to index
    %c0_30 = arith.constant 0 : index
    %c0_31 = arith.constant 0 : index
    %88 = vector.load %arg12[%87, %c0_30, %c0_31] : memref<8x8x128xf32, #tpu.memory_space<vmem>>, vector<1x8x128xf32>
    %89 = vector.shape_cast %88 : vector<1x8x128xf32> to vector<8x128xf32>
    %90 = arith.truncf %82 : vector<8x32xf32> to vector<8x32xbf16>
    %cst_32 = arith.constant dense<0.000000e+00> : vector<8x128xf32>
    %91 = tpu.matmul %90, %2, %cst_32 {dimension_numbers = #tpu.dot_dimension_numbers<[1], [0], [0], [1], [0, 0, 1, 1], [], []>} : vector<8x32xbf16>, vector<32x128xbf16>, vector<8x128xf32> -> vector<8x128xf32>
    %92 = arith.addf %89, %91 : vector<8x128xf32>
    %93 = arith.negf %92 : vector<8x128xf32>
    %94 = math.exp %93 : vector<8x128xf32>
    %cst_33 = arith.constant 1.000000e+00 : f32
    %95 = vector.broadcast %cst_33 : f32 to vector<8x128xf32>
    %96 = arith.addf %95, %94 : vector<8x128xf32>
    %97 = arith.divf %95, %96 : vector<8x128xf32>
    %98 = math.tanh %92 : vector<8x128xf32>
    %99 = vector.extract_strided_slice %97 {offsets = [0, 0], sizes = [8, 32], strides = [1, 1]} : vector<8x128xf32> to vector<8x32xf32>
    %100 = vector.extract_strided_slice %97 {offsets = [0, 32], sizes = [8, 32], strides = [1, 1]} : vector<8x128xf32> to vector<8x32xf32>
    %101 = vector.extract_strided_slice %97 {offsets = [0, 64], sizes = [8, 32], strides = [1, 1]} : vector<8x128xf32> to vector<8x32xf32>
    %102 = vector.extract_strided_slice %98 {offsets = [0, 96], sizes = [8, 32], strides = [1, 1]} : vector<8x128xf32> to vector<8x32xf32>
    %103 = arith.mulf %100, %80 : vector<8x32xf32>
    %104 = arith.mulf %99, %102 : vector<8x32xf32>
    %105 = arith.addf %103, %104 : vector<8x32xf32>
    %106 = math.tanh %105 : vector<8x32xf32>
    %107 = arith.mulf %101, %106 : vector<8x32xf32>
    %108 = arith.index_cast %c3_i32 : i32 to index
    %c0_34 = arith.constant 0 : index
    %c0_35 = arith.constant 0 : index
    %109 = vector.load %arg13[%108, %c0_34, %c0_35] : memref<8x8x32xf32, #tpu.memory_space<vmem>>, vector<1x8x32xf32>
    %110 = vector.shape_cast %109 : vector<1x8x32xf32> to vector<8x32xf32>
    %111 = vector.shape_cast %107 : vector<8x32xf32> to vector<1x8x32xf32>
    tpu.vector_store %arg13[%108, %c0_34, %c0_35], %111 {strides = array<i32>} : memref<8x8x32xf32, #tpu.memory_space<vmem>>, vector<1x8x32xf32>,
    %c4_i32 = arith.constant 4 : i32
    %112 = arith.index_cast %c4_i32 : i32 to index
    %c0_36 = arith.constant 0 : index
    %c0_37 = arith.constant 0 : index
    %113 = vector.load %arg12[%112, %c0_36, %c0_37] : memref<8x8x128xf32, #tpu.memory_space<vmem>>, vector<1x8x128xf32>
    %114 = vector.shape_cast %113 : vector<1x8x128xf32> to vector<8x128xf32>
    %115 = arith.truncf %107 : vector<8x32xf32> to vector<8x32xbf16>
    %cst_38 = arith.constant dense<0.000000e+00> : vector<8x128xf32>
    %116 = tpu.matmul %115, %2, %cst_38 {dimension_numbers = #tpu.dot_dimension_numbers<[1], [0], [0], [1], [0, 0, 1, 1], [], []>} : vector<8x32xbf16>, vector<32x128xbf16>, vector<8x128xf32> -> vector<8x128xf32>
    %117 = arith.addf %114, %116 : vector<8x128xf32>
    %118 = arith.negf %117 : vector<8x128xf32>
    %119 = math.exp %118 : vector<8x128xf32>
    %cst_39 = arith.constant 1.000000e+00 : f32
    %120 = vector.broadcast %cst_39 : f32 to vector<8x128xf32>
    %121 = arith.addf %120, %119 : vector<8x128xf32>
    %122 = arith.divf %120, %121 : vector<8x128xf32>
    %123 = math.tanh %117 : vector<8x128xf32>
    %124 = vector.extract_strided_slice %122 {offsets = [0, 0], sizes = [8, 32], strides = [1, 1]} : vector<8x128xf32> to vector<8x32xf32>
    %125 = vector.extract_strided_slice %122 {offsets = [0, 32], sizes = [8, 32], strides = [1, 1]} : vector<8x128xf32> to vector<8x32xf32>
    %126 = vector.extract_strided_slice %122 {offsets = [0, 64], sizes = [8, 32], strides = [1, 1]} : vector<8x128xf32> to vector<8x32xf32>
    %127 = vector.extract_strided_slice %123 {offsets = [0, 96], sizes = [8, 32], strides = [1, 1]} : vector<8x128xf32> to vector<8x32xf32>
    %128 = arith.mulf %125, %105 : vector<8x32xf32>
    %129 = arith.mulf %124, %127 : vector<8x32xf32>
    %130 = arith.addf %128, %129 : vector<8x32xf32>
    %131 = math.tanh %130 : vector<8x32xf32>
    %132 = arith.mulf %126, %131 : vector<8x32xf32>
    %133 = arith.index_cast %c4_i32 : i32 to index
    %c0_40 = arith.constant 0 : index
    %c0_41 = arith.constant 0 : index
    %134 = vector.load %arg13[%133, %c0_40, %c0_41] : memref<8x8x32xf32, #tpu.memory_space<vmem>>, vector<1x8x32xf32>
    %135 = vector.shape_cast %134 : vector<1x8x32xf32> to vector<8x32xf32>
    %136 = vector.shape_cast %132 : vector<8x32xf32> to vector<1x8x32xf32>
    tpu.vector_store %arg13[%133, %c0_40, %c0_41], %136 {strides = array<i32>} : memref<8x8x32xf32, #tpu.memory_space<vmem>>, vector<1x8x32xf32>,
    %c5_i32 = arith.constant 5 : i32
    %137 = arith.index_cast %c5_i32 : i32 to index
    %c0_42 = arith.constant 0 : index
    %c0_43 = arith.constant 0 : index
    %138 = vector.load %arg12[%137, %c0_42, %c0_43] : memref<8x8x128xf32, #tpu.memory_space<vmem>>, vector<1x8x128xf32>
    %139 = vector.shape_cast %138 : vector<1x8x128xf32> to vector<8x128xf32>
    %140 = arith.truncf %132 : vector<8x32xf32> to vector<8x32xbf16>
    %cst_44 = arith.constant dense<0.000000e+00> : vector<8x128xf32>
    %141 = tpu.matmul %140, %2, %cst_44 {dimension_numbers = #tpu.dot_dimension_numbers<[1], [0], [0], [1], [0, 0, 1, 1], [], []>} : vector<8x32xbf16>, vector<32x128xbf16>, vector<8x128xf32> -> vector<8x128xf32>
    %142 = arith.addf %139, %141 : vector<8x128xf32>
    %143 = arith.negf %142 : vector<8x128xf32>
    %144 = math.exp %143 : vector<8x128xf32>
    %cst_45 = arith.constant 1.000000e+00 : f32
    %145 = vector.broadcast %cst_45 : f32 to vector<8x128xf32>
    %146 = arith.addf %145, %144 : vector<8x128xf32>
    %147 = arith.divf %145, %146 : vector<8x128xf32>
    %148 = math.tanh %142 : vector<8x128xf32>
    %149 = vector.extract_strided_slice %147 {offsets = [0, 0], sizes = [8, 32], strides = [1, 1]} : vector<8x128xf32> to vector<8x32xf32>
    %150 = vector.extract_strided_slice %147 {offsets = [0, 32], sizes = [8, 32], strides = [1, 1]} : vector<8x128xf32> to vector<8x32xf32>
    %151 = vector.extract_strided_slice %147 {offsets = [0, 64], sizes = [8, 32], strides = [1, 1]} : vector<8x128xf32> to vector<8x32xf32>
    %152 = vector.extract_strided_slice %148 {offsets = [0, 96], sizes = [8, 32], strides = [1, 1]} : vector<8x128xf32> to vector<8x32xf32>
    %153 = arith.mulf %150, %130 : vector<8x32xf32>
    %154 = arith.mulf %149, %152 : vector<8x32xf32>
    %155 = arith.addf %153, %154 : vector<8x32xf32>
    %156 = math.tanh %155 : vector<8x32xf32>
    %157 = arith.mulf %151, %156 : vector<8x32xf32>
    %158 = arith.index_cast %c5_i32 : i32 to index
    %c0_46 = arith.constant 0 : index
    %c0_47 = arith.constant 0 : index
    %159 = vector.load %arg13[%158, %c0_46, %c0_47] : memref<8x8x32xf32, #tpu.memory_space<vmem>>, vector<1x8x32xf32>
    %160 = vector.shape_cast %159 : vector<1x8x32xf32> to vector<8x32xf32>
    %161 = vector.shape_cast %157 : vector<8x32xf32> to vector<1x8x32xf32>
    tpu.vector_store %arg13[%158, %c0_46, %c0_47], %161 {strides = array<i32>} : memref<8x8x32xf32, #tpu.memory_space<vmem>>, vector<1x8x32xf32>,
    %c6_i32 = arith.constant 6 : i32
    %162 = arith.index_cast %c6_i32 : i32 to index
    %c0_48 = arith.constant 0 : index
    %c0_49 = arith.constant 0 : index
    %163 = vector.load %arg12[%162, %c0_48, %c0_49] : memref<8x8x128xf32, #tpu.memory_space<vmem>>, vector<1x8x128xf32>
    %164 = vector.shape_cast %163 : vector<1x8x128xf32> to vector<8x128xf32>
    %165 = arith.truncf %157 : vector<8x32xf32> to vector<8x32xbf16>
    %cst_50 = arith.constant dense<0.000000e+00> : vector<8x128xf32>
    %166 = tpu.matmul %165, %2, %cst_50 {dimension_numbers = #tpu.dot_dimension_numbers<[1], [0], [0], [1], [0, 0, 1, 1], [], []>} : vector<8x32xbf16>, vector<32x128xbf16>, vector<8x128xf32> -> vector<8x128xf32>
    %167 = arith.addf %164, %166 : vector<8x128xf32>
    %168 = arith.negf %167 : vector<8x128xf32>
    %169 = math.exp %168 : vector<8x128xf32>
    %cst_51 = arith.constant 1.000000e+00 : f32
    %170 = vector.broadcast %cst_51 : f32 to vector<8x128xf32>
    %171 = arith.addf %170, %169 : vector<8x128xf32>
    %172 = arith.divf %170, %171 : vector<8x128xf32>
    %173 = math.tanh %167 : vector<8x128xf32>
    %174 = vector.extract_strided_slice %172 {offsets = [0, 0], sizes = [8, 32], strides = [1, 1]} : vector<8x128xf32> to vector<8x32xf32>
    %175 = vector.extract_strided_slice %172 {offsets = [0, 32], sizes = [8, 32], strides = [1, 1]} : vector<8x128xf32> to vector<8x32xf32>
    %176 = vector.extract_strided_slice %172 {offsets = [0, 64], sizes = [8, 32], strides = [1, 1]} : vector<8x128xf32> to vector<8x32xf32>
    %177 = vector.extract_strided_slice %173 {offsets = [0, 96], sizes = [8, 32], strides = [1, 1]} : vector<8x128xf32> to vector<8x32xf32>
    %178 = arith.mulf %175, %155 : vector<8x32xf32>
    %179 = arith.mulf %174, %177 : vector<8x32xf32>
    %180 = arith.addf %178, %179 : vector<8x32xf32>
    %181 = math.tanh %180 : vector<8x32xf32>
    %182 = arith.mulf %176, %181 : vector<8x32xf32>
    %183 = arith.index_cast %c6_i32 : i32 to index
    %c0_52 = arith.constant 0 : index
    %c0_53 = arith.constant 0 : index
    %184 = vector.load %arg13[%183, %c0_52, %c0_53] : memref<8x8x32xf32, #tpu.memory_space<vmem>>, vector<1x8x32xf32>
    %185 = vector.shape_cast %184 : vector<1x8x32xf32> to vector<8x32xf32>
    %186 = vector.shape_cast %182 : vector<8x32xf32> to vector<1x8x32xf32>
    tpu.vector_store %arg13[%183, %c0_52, %c0_53], %186 {strides = array<i32>} : memref<8x8x32xf32, #tpu.memory_space<vmem>>, vector<1x8x32xf32>,
    %c7_i32 = arith.constant 7 : i32
    %187 = arith.index_cast %c7_i32 : i32 to index
    %c0_54 = arith.constant 0 : index
    %c0_55 = arith.constant 0 : index
    %188 = vector.load %arg12[%187, %c0_54, %c0_55] : memref<8x8x128xf32, #tpu.memory_space<vmem>>, vector<1x8x128xf32>
    %189 = vector.shape_cast %188 : vector<1x8x128xf32> to vector<8x128xf32>
    %190 = arith.truncf %182 : vector<8x32xf32> to vector<8x32xbf16>
    %cst_56 = arith.constant dense<0.000000e+00> : vector<8x128xf32>
    %191 = tpu.matmul %190, %2, %cst_56 {dimension_numbers = #tpu.dot_dimension_numbers<[1], [0], [0], [1], [0, 0, 1, 1], [], []>} : vector<8x32xbf16>, vector<32x128xbf16>, vector<8x128xf32> -> vector<8x128xf32>
    %192 = arith.addf %189, %191 : vector<8x128xf32>
    %193 = arith.negf %192 : vector<8x128xf32>
    %194 = math.exp %193 : vector<8x128xf32>
    %cst_57 = arith.constant 1.000000e+00 : f32
    %195 = vector.broadcast %cst_57 : f32 to vector<8x128xf32>
    %196 = arith.addf %195, %194 : vector<8x128xf32>
    %197 = arith.divf %195, %196 : vector<8x128xf32>
    %198 = math.tanh %192 : vector<8x128xf32>
    %199 = vector.extract_strided_slice %197 {offsets = [0, 0], sizes = [8, 32], strides = [1, 1]} : vector<8x128xf32> to vector<8x32xf32>
    %200 = vector.extract_strided_slice %197 {offsets = [0, 32], sizes = [8, 32], strides = [1, 1]} : vector<8x128xf32> to vector<8x32xf32>
    %201 = vector.extract_strided_slice %197 {offsets = [0, 64], sizes = [8, 32], strides = [1, 1]} : vector<8x128xf32> to vector<8x32xf32>
    %202 = vector.extract_strided_slice %198 {offsets = [0, 96], sizes = [8, 32], strides = [1, 1]} : vector<8x128xf32> to vector<8x32xf32>
    %203 = arith.mulf %200, %180 : vector<8x32xf32>
    %204 = arith.mulf %199, %202 : vector<8x32xf32>
    %205 = arith.addf %203, %204 : vector<8x32xf32>
    %206 = math.tanh %205 : vector<8x32xf32>
    %207 = arith.mulf %201, %206 : vector<8x32xf32>
    %208 = arith.index_cast %c7_i32 : i32 to index
    %c0_58 = arith.constant 0 : index
    %c0_59 = arith.constant 0 : index
    %209 = vector.load %arg13[%208, %c0_58, %c0_59] : memref<8x8x32xf32, #tpu.memory_space<vmem>>, vector<1x8x32xf32>
    %210 = vector.shape_cast %209 : vector<1x8x32xf32> to vector<8x32xf32>
    %211 = vector.shape_cast %207 : vector<8x32xf32> to vector<1x8x32xf32>
    tpu.vector_store %arg13[%208, %c0_58, %c0_59], %211 {strides = array<i32>} : memref<8x8x32xf32, #tpu.memory_space<vmem>>, vector<1x8x32xf32>,
    %c8_i32 = arith.constant 8 : i32
    %c0_60 = arith.constant 0 : index
    %c0_61 = arith.constant 0 : index
    %c0_62 = arith.constant 0 : index
    %212 = vector.load %arg10[%c0_60, %c0_61, %c0_62] : memref<2x8x32xf32, #tpu.memory_space<vmem>>, vector<1x8x32xf32>
    %213 = vector.shape_cast %212 : vector<1x8x32xf32> to vector<8x32xf32>
    %214 = vector.shape_cast %207 : vector<8x32xf32> to vector<1x8x32xf32>
    tpu.vector_store %arg10[%c0_60, %c0_61, %c0_62], %214 {strides = array<i32>} : memref<2x8x32xf32, #tpu.memory_space<vmem>>, vector<1x8x32xf32>,
    %c0_63 = arith.constant 0 : index
    %c0_64 = arith.constant 0 : index
    %c0_65 = arith.constant 0 : index
    %215 = vector.load %arg11[%c0_63, %c0_64, %c0_65] : memref<2x8x32xf32, #tpu.memory_space<vmem>>, vector<1x8x32xf32>
    %216 = vector.shape_cast %215 : vector<1x8x32xf32> to vector<8x32xf32>
    %217 = vector.shape_cast %205 : vector<8x32xf32> to vector<1x8x32xf32>
    tpu.vector_store %arg11[%c0_63, %c0_64, %c0_65], %217 {strides = array<i32>} : memref<2x8x32xf32, #tpu.memory_space<vmem>>, vector<1x8x32xf32>,
    %c0_66 = arith.constant 0 : index
    %c0_67 = arith.constant 0 : index
    %218 = vector.load %arg4[%c0_66, %c0_67] : memref<32x128xf32, #tpu.memory_space<vmem>>, vector<32x128xf32>
    %c0_68 = arith.constant 0 : index
    %c0_69 = arith.constant 0 : index
    %219 = vector.load %arg5[%c0_68, %c0_69] : memref<32x128xf32, #tpu.memory_space<vmem>>, vector<32x128xf32>
    %220 = arith.truncf %219 : vector<32x128xf32> to vector<32x128xbf16>
    %c0_70 = arith.constant 0 : index
    %c0_71 = arith.constant 0 : index
    %221 = vector.load %arg6[%c0_70, %c0_71] : memref<1x128xf32, #tpu.memory_space<vmem>>, vector<1x128xf32>
    %c0_72 = arith.constant 0 : index
    %c0_73 = arith.constant 0 : index
    %c0_74 = arith.constant 0 : index
    %222 = vector.load %arg13[%c0_72, %c0_73, %c0_74] : memref<8x8x32xf32, #tpu.memory_space<vmem>>, vector<8x8x32xf32>
    %223 = vector.shape_cast %222 : vector<8x8x32xf32> to vector<64x32xf32>
    %cst_75 = arith.constant dense<0.000000e+00> : vector<64x128xf32>
    %224 = tpu.matmul %223, %218, %cst_75 {dimension_numbers = #tpu.dot_dimension_numbers<[1], [0], [0], [1], [0, 0, 1, 1], [], []>} : vector<64x32xf32>, vector<32x128xf32>, vector<64x128xf32> -> vector<64x128xf32>
    %225 = vector.broadcast %221 : vector<1x128xf32> to vector<64x128xf32>
    %226 = arith.addf %224, %225 : vector<64x128xf32>
    %227 = vector.shape_cast %226 : vector<64x128xf32> to vector<8x8x128xf32>
    %c0_76 = arith.constant 0 : index
    %c0_77 = arith.constant 0 : index
    %c0_78 = arith.constant 0 : index
    %228 = vector.load %arg12[%c0_76, %c0_77, %c0_78] : memref<8x8x128xf32, #tpu.memory_space<vmem>>, vector<8x8x128xf32>
    tpu.vector_store %arg12[%c0_76, %c0_77, %c0_78], %227 {strides = array<i32>} : memref<8x8x128xf32, #tpu.memory_space<vmem>>, vector<8x8x128xf32>,
    %cst_79 = arith.constant 0.000000e+00 : f32
    %229 = vector.broadcast %cst_79 : f32 to vector<8x32xf32>
    %cst_80 = arith.constant 0.000000e+00 : f32
    %230 = vector.broadcast %cst_80 : f32 to vector<8x32xf32>
    %c0_i32_81 = arith.constant 0 : i32
    %231 = arith.index_cast %c0_i32_81 : i32 to index
    %c0_82 = arith.constant 0 : index
    %c0_83 = arith.constant 0 : index
    %232 = vector.load %arg12[%231, %c0_82, %c0_83] : memref<8x8x128xf32, #tpu.memory_space<vmem>>, vector<1x8x128xf32>
    %233 = vector.shape_cast %232 : vector<1x8x128xf32> to vector<8x128xf32>
    %234 = arith.truncf %229 : vector<8x32xf32> to vector<8x32xbf16>
    %cst_84 = arith.constant dense<0.000000e+00> : vector<8x128xf32>
    %235 = tpu.matmul %234, %220, %cst_84 {dimension_numbers = #tpu.dot_dimension_numbers<[1], [0], [0], [1], [0, 0, 1, 1], [], []>} : vector<8x32xbf16>, vector<32x128xbf16>, vector<8x128xf32> -> vector<8x128xf32>
    %236 = arith.addf %233, %235 : vector<8x128xf32>
    %237 = arith.negf %236 : vector<8x128xf32>
    %238 = math.exp %237 : vector<8x128xf32>
    %cst_85 = arith.constant 1.000000e+00 : f32
    %239 = vector.broadcast %cst_85 : f32 to vector<8x128xf32>
    %240 = arith.addf %239, %238 : vector<8x128xf32>
    %241 = arith.divf %239, %240 : vector<8x128xf32>
    %242 = math.tanh %236 : vector<8x128xf32>
    %243 = vector.extract_strided_slice %241 {offsets = [0, 0], sizes = [8, 32], strides = [1, 1]} : vector<8x128xf32> to vector<8x32xf32>
    %244 = vector.extract_strided_slice %241 {offsets = [0, 32], sizes = [8, 32], strides = [1, 1]} : vector<8x128xf32> to vector<8x32xf32>
    %245 = vector.extract_strided_slice %241 {offsets = [0, 64], sizes = [8, 32], strides = [1, 1]} : vector<8x128xf32> to vector<8x32xf32>
    %246 = vector.extract_strided_slice %242 {offsets = [0, 96], sizes = [8, 32], strides = [1, 1]} : vector<8x128xf32> to vector<8x32xf32>
    %247 = arith.mulf %244, %230 : vector<8x32xf32>
    %248 = arith.mulf %243, %246 : vector<8x32xf32>
    %249 = arith.addf %247, %248 : vector<8x32xf32>
    %250 = math.tanh %249 : vector<8x32xf32>
    %251 = arith.mulf %245, %250 : vector<8x32xf32>
    %252 = arith.index_cast %c0_i32_81 : i32 to index
    %c0_86 = arith.constant 0 : index
    %c0_87 = arith.constant 0 : index
    %253 = vector.load %arg13[%252, %c0_86, %c0_87] : memref<8x8x32xf32, #tpu.memory_space<vmem>>, vector<1x8x32xf32>
    %254 = vector.shape_cast %253 : vector<1x8x32xf32> to vector<8x32xf32>
    %255 = vector.shape_cast %251 : vector<8x32xf32> to vector<1x8x32xf32>
    tpu.vector_store %arg13[%252, %c0_86, %c0_87], %255 {strides = array<i32>} : memref<8x8x32xf32, #tpu.memory_space<vmem>>, vector<1x8x32xf32>,
    %c1_i32_88 = arith.constant 1 : i32
    %256 = arith.index_cast %c1_i32_88 : i32 to index
    %c0_89 = arith.constant 0 : index
    %c0_90 = arith.constant 0 : index
    %257 = vector.load %arg12[%256, %c0_89, %c0_90] : memref<8x8x128xf32, #tpu.memory_space<vmem>>, vector<1x8x128xf32>
    %258 = vector.shape_cast %257 : vector<1x8x128xf32> to vector<8x128xf32>
    %259 = arith.truncf %251 : vector<8x32xf32> to vector<8x32xbf16>
    %cst_91 = arith.constant dense<0.000000e+00> : vector<8x128xf32>
    %260 = tpu.matmul %259, %220, %cst_91 {dimension_numbers = #tpu.dot_dimension_numbers<[1], [0], [0], [1], [0, 0, 1, 1], [], []>} : vector<8x32xbf16>, vector<32x128xbf16>, vector<8x128xf32> -> vector<8x128xf32>
    %261 = arith.addf %258, %260 : vector<8x128xf32>
    %262 = arith.negf %261 : vector<8x128xf32>
    %263 = math.exp %262 : vector<8x128xf32>
    %cst_92 = arith.constant 1.000000e+00 : f32
    %264 = vector.broadcast %cst_92 : f32 to vector<8x128xf32>
    %265 = arith.addf %264, %263 : vector<8x128xf32>
    %266 = arith.divf %264, %265 : vector<8x128xf32>
    %267 = math.tanh %261 : vector<8x128xf32>
    %268 = vector.extract_strided_slice %266 {offsets = [0, 0], sizes = [8, 32], strides = [1, 1]} : vector<8x128xf32> to vector<8x32xf32>
    %269 = vector.extract_strided_slice %266 {offsets = [0, 32], sizes = [8, 32], strides = [1, 1]} : vector<8x128xf32> to vector<8x32xf32>
    %270 = vector.extract_strided_slice %266 {offsets = [0, 64], sizes = [8, 32], strides = [1, 1]} : vector<8x128xf32> to vector<8x32xf32>
    %271 = vector.extract_strided_slice %267 {offsets = [0, 96], sizes = [8, 32], strides = [1, 1]} : vector<8x128xf32> to vector<8x32xf32>
    %272 = arith.mulf %269, %249 : vector<8x32xf32>
    %273 = arith.mulf %268, %271 : vector<8x32xf32>
    %274 = arith.addf %272, %273 : vector<8x32xf32>
    %275 = math.tanh %274 : vector<8x32xf32>
    %276 = arith.mulf %270, %275 : vector<8x32xf32>
    %277 = arith.index_cast %c1_i32_88 : i32 to index
    %c0_93 = arith.constant 0 : index
    %c0_94 = arith.constant 0 : index
    %278 = vector.load %arg13[%277, %c0_93, %c0_94] : memref<8x8x32xf32, #tpu.memory_space<vmem>>, vector<1x8x32xf32>
    %279 = vector.shape_cast %278 : vector<1x8x32xf32> to vector<8x32xf32>
    %280 = vector.shape_cast %276 : vector<8x32xf32> to vector<1x8x32xf32>
    tpu.vector_store %arg13[%277, %c0_93, %c0_94], %280 {strides = array<i32>} : memref<8x8x32xf32, #tpu.memory_space<vmem>>, vector<1x8x32xf32>,
    %c2_i32_95 = arith.constant 2 : i32
    %281 = arith.index_cast %c2_i32_95 : i32 to index
    %c0_96 = arith.constant 0 : index
    %c0_97 = arith.constant 0 : index
    %282 = vector.load %arg12[%281, %c0_96, %c0_97] : memref<8x8x128xf32, #tpu.memory_space<vmem>>, vector<1x8x128xf32>
    %283 = vector.shape_cast %282 : vector<1x8x128xf32> to vector<8x128xf32>
    %284 = arith.truncf %276 : vector<8x32xf32> to vector<8x32xbf16>
    %cst_98 = arith.constant dense<0.000000e+00> : vector<8x128xf32>
    %285 = tpu.matmul %284, %220, %cst_98 {dimension_numbers = #tpu.dot_dimension_numbers<[1], [0], [0], [1], [0, 0, 1, 1], [], []>} : vector<8x32xbf16>, vector<32x128xbf16>, vector<8x128xf32> -> vector<8x128xf32>
    %286 = arith.addf %283, %285 : vector<8x128xf32>
    %287 = arith.negf %286 : vector<8x128xf32>
    %288 = math.exp %287 : vector<8x128xf32>
    %cst_99 = arith.constant 1.000000e+00 : f32
    %289 = vector.broadcast %cst_99 : f32 to vector<8x128xf32>
    %290 = arith.addf %289, %288 : vector<8x128xf32>
    %291 = arith.divf %289, %290 : vector<8x128xf32>
    %292 = math.tanh %286 : vector<8x128xf32>
    %293 = vector.extract_strided_slice %291 {offsets = [0, 0], sizes = [8, 32], strides = [1, 1]} : vector<8x128xf32> to vector<8x32xf32>
    %294 = vector.extract_strided_slice %291 {offsets = [0, 32], sizes = [8, 32], strides = [1, 1]} : vector<8x128xf32> to vector<8x32xf32>
    %295 = vector.extract_strided_slice %291 {offsets = [0, 64], sizes = [8, 32], strides = [1, 1]} : vector<8x128xf32> to vector<8x32xf32>
    %296 = vector.extract_strided_slice %292 {offsets = [0, 96], sizes = [8, 32], strides = [1, 1]} : vector<8x128xf32> to vector<8x32xf32>
    %297 = arith.mulf %294, %274 : vector<8x32xf32>
    %298 = arith.mulf %293, %296 : vector<8x32xf32>
    %299 = arith.addf %297, %298 : vector<8x32xf32>
    %300 = math.tanh %299 : vector<8x32xf32>
    %301 = arith.mulf %295, %300 : vector<8x32xf32>
    %302 = arith.index_cast %c2_i32_95 : i32 to index
    %c0_100 = arith.constant 0 : index
    %c0_101 = arith.constant 0 : index
    %303 = vector.load %arg13[%302, %c0_100, %c0_101] : memref<8x8x32xf32, #tpu.memory_space<vmem>>, vector<1x8x32xf32>
    %304 = vector.shape_cast %303 : vector<1x8x32xf32> to vector<8x32xf32>
    %305 = vector.shape_cast %301 : vector<8x32xf32> to vector<1x8x32xf32>
    tpu.vector_store %arg13[%302, %c0_100, %c0_101], %305 {strides = array<i32>} : memref<8x8x32xf32, #tpu.memory_space<vmem>>, vector<1x8x32xf32>,
    %c3_i32_102 = arith.constant 3 : i32
    %306 = arith.index_cast %c3_i32_102 : i32 to index
    %c0_103 = arith.constant 0 : index
    %c0_104 = arith.constant 0 : index
    %307 = vector.load %arg12[%306, %c0_103, %c0_104] : memref<8x8x128xf32, #tpu.memory_space<vmem>>, vector<1x8x128xf32>
    %308 = vector.shape_cast %307 : vector<1x8x128xf32> to vector<8x128xf32>
    %309 = arith.truncf %301 : vector<8x32xf32> to vector<8x32xbf16>
    %cst_105 = arith.constant dense<0.000000e+00> : vector<8x128xf32>
    %310 = tpu.matmul %309, %220, %cst_105 {dimension_numbers = #tpu.dot_dimension_numbers<[1], [0], [0], [1], [0, 0, 1, 1], [], []>} : vector<8x32xbf16>, vector<32x128xbf16>, vector<8x128xf32> -> vector<8x128xf32>
    %311 = arith.addf %308, %310 : vector<8x128xf32>
    %312 = arith.negf %311 : vector<8x128xf32>
    %313 = math.exp %312 : vector<8x128xf32>
    %cst_106 = arith.constant 1.000000e+00 : f32
    %314 = vector.broadcast %cst_106 : f32 to vector<8x128xf32>
    %315 = arith.addf %314, %313 : vector<8x128xf32>
    %316 = arith.divf %314, %315 : vector<8x128xf32>
    %317 = math.tanh %311 : vector<8x128xf32>
    %318 = vector.extract_strided_slice %316 {offsets = [0, 0], sizes = [8, 32], strides = [1, 1]} : vector<8x128xf32> to vector<8x32xf32>
    %319 = vector.extract_strided_slice %316 {offsets = [0, 32], sizes = [8, 32], strides = [1, 1]} : vector<8x128xf32> to vector<8x32xf32>
    %320 = vector.extract_strided_slice %316 {offsets = [0, 64], sizes = [8, 32], strides = [1, 1]} : vector<8x128xf32> to vector<8x32xf32>
    %321 = vector.extract_strided_slice %317 {offsets = [0, 96], sizes = [8, 32], strides = [1, 1]} : vector<8x128xf32> to vector<8x32xf32>
    %322 = arith.mulf %319, %299 : vector<8x32xf32>
    %323 = arith.mulf %318, %321 : vector<8x32xf32>
    %324 = arith.addf %322, %323 : vector<8x32xf32>
    %325 = math.tanh %324 : vector<8x32xf32>
    %326 = arith.mulf %320, %325 : vector<8x32xf32>
    %327 = arith.index_cast %c3_i32_102 : i32 to index
    %c0_107 = arith.constant 0 : index
    %c0_108 = arith.constant 0 : index
    %328 = vector.load %arg13[%327, %c0_107, %c0_108] : memref<8x8x32xf32, #tpu.memory_space<vmem>>, vector<1x8x32xf32>
    %329 = vector.shape_cast %328 : vector<1x8x32xf32> to vector<8x32xf32>
    %330 = vector.shape_cast %326 : vector<8x32xf32> to vector<1x8x32xf32>
    tpu.vector_store %arg13[%327, %c0_107, %c0_108], %330 {strides = array<i32>} : memref<8x8x32xf32, #tpu.memory_space<vmem>>, vector<1x8x32xf32>,
    %c4_i32_109 = arith.constant 4 : i32
    %331 = arith.index_cast %c4_i32_109 : i32 to index
    %c0_110 = arith.constant 0 : index
    %c0_111 = arith.constant 0 : index
    %332 = vector.load %arg12[%331, %c0_110, %c0_111] : memref<8x8x128xf32, #tpu.memory_space<vmem>>, vector<1x8x128xf32>
    %333 = vector.shape_cast %332 : vector<1x8x128xf32> to vector<8x128xf32>
    %334 = arith.truncf %326 : vector<8x32xf32> to vector<8x32xbf16>
    %cst_112 = arith.constant dense<0.000000e+00> : vector<8x128xf32>
    %335 = tpu.matmul %334, %220, %cst_112 {dimension_numbers = #tpu.dot_dimension_numbers<[1], [0], [0], [1], [0, 0, 1, 1], [], []>} : vector<8x32xbf16>, vector<32x128xbf16>, vector<8x128xf32> -> vector<8x128xf32>
    %336 = arith.addf %333, %335 : vector<8x128xf32>
    %337 = arith.negf %336 : vector<8x128xf32>
    %338 = math.exp %337 : vector<8x128xf32>
    %cst_113 = arith.constant 1.000000e+00 : f32
    %339 = vector.broadcast %cst_113 : f32 to vector<8x128xf32>
    %340 = arith.addf %339, %338 : vector<8x128xf32>
    %341 = arith.divf %339, %340 : vector<8x128xf32>
    %342 = math.tanh %336 : vector<8x128xf32>
    %343 = vector.extract_strided_slice %341 {offsets = [0, 0], sizes = [8, 32], strides = [1, 1]} : vector<8x128xf32> to vector<8x32xf32>
    %344 = vector.extract_strided_slice %341 {offsets = [0, 32], sizes = [8, 32], strides = [1, 1]} : vector<8x128xf32> to vector<8x32xf32>
    %345 = vector.extract_strided_slice %341 {offsets = [0, 64], sizes = [8, 32], strides = [1, 1]} : vector<8x128xf32> to vector<8x32xf32>
    %346 = vector.extract_strided_slice %342 {offsets = [0, 96], sizes = [8, 32], strides = [1, 1]} : vector<8x128xf32> to vector<8x32xf32>
    %347 = arith.mulf %344, %324 : vector<8x32xf32>
    %348 = arith.mulf %343, %346 : vector<8x32xf32>
    %349 = arith.addf %347, %348 : vector<8x32xf32>
    %350 = math.tanh %349 : vector<8x32xf32>
    %351 = arith.mulf %345, %350 : vector<8x32xf32>
    %352 = arith.index_cast %c4_i32_109 : i32 to index
    %c0_114 = arith.constant 0 : index
    %c0_115 = arith.constant 0 : index
    %353 = vector.load %arg13[%352, %c0_114, %c0_115] : memref<8x8x32xf32, #tpu.memory_space<vmem>>, vector<1x8x32xf32>
    %354 = vector.shape_cast %353 : vector<1x8x32xf32> to vector<8x32xf32>
    %355 = vector.shape_cast %351 : vector<8x32xf32> to vector<1x8x32xf32>
    tpu.vector_store %arg13[%352, %c0_114, %c0_115], %355 {strides = array<i32>} : memref<8x8x32xf32, #tpu.memory_space<vmem>>, vector<1x8x32xf32>,
    %c5_i32_116 = arith.constant 5 : i32
    %356 = arith.index_cast %c5_i32_116 : i32 to index
    %c0_117 = arith.constant 0 : index
    %c0_118 = arith.constant 0 : index
    %357 = vector.load %arg12[%356, %c0_117, %c0_118] : memref<8x8x128xf32, #tpu.memory_space<vmem>>, vector<1x8x128xf32>
    %358 = vector.shape_cast %357 : vector<1x8x128xf32> to vector<8x128xf32>
    %359 = arith.truncf %351 : vector<8x32xf32> to vector<8x32xbf16>
    %cst_119 = arith.constant dense<0.000000e+00> : vector<8x128xf32>
    %360 = tpu.matmul %359, %220, %cst_119 {dimension_numbers = #tpu.dot_dimension_numbers<[1], [0], [0], [1], [0, 0, 1, 1], [], []>} : vector<8x32xbf16>, vector<32x128xbf16>, vector<8x128xf32> -> vector<8x128xf32>
    %361 = arith.addf %358, %360 : vector<8x128xf32>
    %362 = arith.negf %361 : vector<8x128xf32>
    %363 = math.exp %362 : vector<8x128xf32>
    %cst_120 = arith.constant 1.000000e+00 : f32
    %364 = vector.broadcast %cst_120 : f32 to vector<8x128xf32>
    %365 = arith.addf %364, %363 : vector<8x128xf32>
    %366 = arith.divf %364, %365 : vector<8x128xf32>
    %367 = math.tanh %361 : vector<8x128xf32>
    %368 = vector.extract_strided_slice %366 {offsets = [0, 0], sizes = [8, 32], strides = [1, 1]} : vector<8x128xf32> to vector<8x32xf32>
    %369 = vector.extract_strided_slice %366 {offsets = [0, 32], sizes = [8, 32], strides = [1, 1]} : vector<8x128xf32> to vector<8x32xf32>
    %370 = vector.extract_strided_slice %366 {offsets = [0, 64], sizes = [8, 32], strides = [1, 1]} : vector<8x128xf32> to vector<8x32xf32>
    %371 = vector.extract_strided_slice %367 {offsets = [0, 96], sizes = [8, 32], strides = [1, 1]} : vector<8x128xf32> to vector<8x32xf32>
    %372 = arith.mulf %369, %349 : vector<8x32xf32>
    %373 = arith.mulf %368, %371 : vector<8x32xf32>
    %374 = arith.addf %372, %373 : vector<8x32xf32>
    %375 = math.tanh %374 : vector<8x32xf32>
    %376 = arith.mulf %370, %375 : vector<8x32xf32>
    %377 = arith.index_cast %c5_i32_116 : i32 to index
    %c0_121 = arith.constant 0 : index
    %c0_122 = arith.constant 0 : index
    %378 = vector.load %arg13[%377, %c0_121, %c0_122] : memref<8x8x32xf32, #tpu.memory_space<vmem>>, vector<1x8x32xf32>
    %379 = vector.shape_cast %378 : vector<1x8x32xf32> to vector<8x32xf32>
    %380 = vector.shape_cast %376 : vector<8x32xf32> to vector<1x8x32xf32>
    tpu.vector_store %arg13[%377, %c0_121, %c0_122], %380 {strides = array<i32>} : memref<8x8x32xf32, #tpu.memory_space<vmem>>, vector<1x8x32xf32>,
    %c6_i32_123 = arith.constant 6 : i32
    %381 = arith.index_cast %c6_i32_123 : i32 to index
    %c0_124 = arith.constant 0 : index
    %c0_125 = arith.constant 0 : index
    %382 = vector.load %arg12[%381, %c0_124, %c0_125] : memref<8x8x128xf32, #tpu.memory_space<vmem>>, vector<1x8x128xf32>
    %383 = vector.shape_cast %382 : vector<1x8x128xf32> to vector<8x128xf32>
    %384 = arith.truncf %376 : vector<8x32xf32> to vector<8x32xbf16>
    %cst_126 = arith.constant dense<0.000000e+00> : vector<8x128xf32>
    %385 = tpu.matmul %384, %220, %cst_126 {dimension_numbers = #tpu.dot_dimension_numbers<[1], [0], [0], [1], [0, 0, 1, 1], [], []>} : vector<8x32xbf16>, vector<32x128xbf16>, vector<8x128xf32> -> vector<8x128xf32>
    %386 = arith.addf %383, %385 : vector<8x128xf32>
    %387 = arith.negf %386 : vector<8x128xf32>
    %388 = math.exp %387 : vector<8x128xf32>
    %cst_127 = arith.constant 1.000000e+00 : f32
    %389 = vector.broadcast %cst_127 : f32 to vector<8x128xf32>
    %390 = arith.addf %389, %388 : vector<8x128xf32>
    %391 = arith.divf %389, %390 : vector<8x128xf32>
    %392 = math.tanh %386 : vector<8x128xf32>
    %393 = vector.extract_strided_slice %391 {offsets = [0, 0], sizes = [8, 32], strides = [1, 1]} : vector<8x128xf32> to vector<8x32xf32>
    %394 = vector.extract_strided_slice %391 {offsets = [0, 32], sizes = [8, 32], strides = [1, 1]} : vector<8x128xf32> to vector<8x32xf32>
    %395 = vector.extract_strided_slice %391 {offsets = [0, 64], sizes = [8, 32], strides = [1, 1]} : vector<8x128xf32> to vector<8x32xf32>
    %396 = vector.extract_strided_slice %392 {offsets = [0, 96], sizes = [8, 32], strides = [1, 1]} : vector<8x128xf32> to vector<8x32xf32>
    %397 = arith.mulf %394, %374 : vector<8x32xf32>
    %398 = arith.mulf %393, %396 : vector<8x32xf32>
    %399 = arith.addf %397, %398 : vector<8x32xf32>
    %400 = math.tanh %399 : vector<8x32xf32>
    %401 = arith.mulf %395, %400 : vector<8x32xf32>
    %402 = arith.index_cast %c6_i32_123 : i32 to index
    %c0_128 = arith.constant 0 : index
    %c0_129 = arith.constant 0 : index
    %403 = vector.load %arg13[%402, %c0_128, %c0_129] : memref<8x8x32xf32, #tpu.memory_space<vmem>>, vector<1x8x32xf32>
    %404 = vector.shape_cast %403 : vector<1x8x32xf32> to vector<8x32xf32>
    %405 = vector.shape_cast %401 : vector<8x32xf32> to vector<1x8x32xf32>
    tpu.vector_store %arg13[%402, %c0_128, %c0_129], %405 {strides = array<i32>} : memref<8x8x32xf32, #tpu.memory_space<vmem>>, vector<1x8x32xf32>,
    %c7_i32_130 = arith.constant 7 : i32
    %406 = arith.index_cast %c7_i32_130 : i32 to index
    %c0_131 = arith.constant 0 : index
    %c0_132 = arith.constant 0 : index
    %407 = vector.load %arg12[%406, %c0_131, %c0_132] : memref<8x8x128xf32, #tpu.memory_space<vmem>>, vector<1x8x128xf32>
    %408 = vector.shape_cast %407 : vector<1x8x128xf32> to vector<8x128xf32>
    %409 = arith.truncf %401 : vector<8x32xf32> to vector<8x32xbf16>
    %cst_133 = arith.constant dense<0.000000e+00> : vector<8x128xf32>
    %410 = tpu.matmul %409, %220, %cst_133 {dimension_numbers = #tpu.dot_dimension_numbers<[1], [0], [0], [1], [0, 0, 1, 1], [], []>} : vector<8x32xbf16>, vector<32x128xbf16>, vector<8x128xf32> -> vector<8x128xf32>
    %411 = arith.addf %408, %410 : vector<8x128xf32>
    %412 = arith.negf %411 : vector<8x128xf32>
    %413 = math.exp %412 : vector<8x128xf32>
    %cst_134 = arith.constant 1.000000e+00 : f32
    %414 = vector.broadcast %cst_134 : f32 to vector<8x128xf32>
    %415 = arith.addf %414, %413 : vector<8x128xf32>
    %416 = arith.divf %414, %415 : vector<8x128xf32>
    %417 = math.tanh %411 : vector<8x128xf32>
    %418 = vector.extract_strided_slice %416 {offsets = [0, 0], sizes = [8, 32], strides = [1, 1]} : vector<8x128xf32> to vector<8x32xf32>
    %419 = vector.extract_strided_slice %416 {offsets = [0, 32], sizes = [8, 32], strides = [1, 1]} : vector<8x128xf32> to vector<8x32xf32>
    %420 = vector.extract_strided_slice %416 {offsets = [0, 64], sizes = [8, 32], strides = [1, 1]} : vector<8x128xf32> to vector<8x32xf32>
    %421 = vector.extract_strided_slice %417 {offsets = [0, 96], sizes = [8, 32], strides = [1, 1]} : vector<8x128xf32> to vector<8x32xf32>
    %422 = arith.mulf %419, %399 : vector<8x32xf32>
    %423 = arith.mulf %418, %421 : vector<8x32xf32>
    %424 = arith.addf %422, %423 : vector<8x32xf32>
    %425 = math.tanh %424 : vector<8x32xf32>
    %426 = arith.mulf %420, %425 : vector<8x32xf32>
    %427 = arith.index_cast %c7_i32_130 : i32 to index
    %c0_135 = arith.constant 0 : index
    %c0_136 = arith.constant 0 : index
    %428 = vector.load %arg13[%427, %c0_135, %c0_136] : memref<8x8x32xf32, #tpu.memory_space<vmem>>, vector<1x8x32xf32>
    %429 = vector.shape_cast %428 : vector<1x8x32xf32> to vector<8x32xf32>
    %430 = vector.shape_cast %426 : vector<8x32xf32> to vector<1x8x32xf32>
    tpu.vector_store %arg13[%427, %c0_135, %c0_136], %430 {strides = array<i32>} : memref<8x8x32xf32, #tpu.memory_space<vmem>>, vector<1x8x32xf32>,
    %c8_i32_137 = arith.constant 8 : i32
    %c1 = arith.constant 1 : index
    %c0_138 = arith.constant 0 : index
    %c0_139 = arith.constant 0 : index
    %431 = vector.load %arg10[%c1, %c0_138, %c0_139] : memref<2x8x32xf32, #tpu.memory_space<vmem>>, vector<1x8x32xf32>
    %432 = vector.shape_cast %431 : vector<1x8x32xf32> to vector<8x32xf32>
    %433 = vector.shape_cast %426 : vector<8x32xf32> to vector<1x8x32xf32>
    tpu.vector_store %arg10[%c1, %c0_138, %c0_139], %433 {strides = array<i32>} : memref<2x8x32xf32, #tpu.memory_space<vmem>>, vector<1x8x32xf32>,
    %c1_140 = arith.constant 1 : index
    %c0_141 = arith.constant 0 : index
    %c0_142 = arith.constant 0 : index
    %434 = vector.load %arg11[%c1_140, %c0_141, %c0_142] : memref<2x8x32xf32, #tpu.memory_space<vmem>>, vector<1x8x32xf32>
    %435 = vector.shape_cast %434 : vector<1x8x32xf32> to vector<8x32xf32>
    %436 = vector.shape_cast %424 : vector<8x32xf32> to vector<1x8x32xf32>
    tpu.vector_store %arg11[%c1_140, %c0_141, %c0_142], %436 {strides = array<i32>} : memref<2x8x32xf32, #tpu.memory_space<vmem>>, vector<1x8x32xf32>,
    %c0_143 = arith.constant 0 : index
    %c0_144 = arith.constant 0 : index
    %437 = vector.load %arg7[%c0_143, %c0_144] : memref<32x32xf32, #tpu.memory_space<vmem>>, vector<32x32xf32>
    %cst_145 = arith.constant dense<0.000000e+00> : vector<8x32xf32>
    %438 = tpu.matmul %426, %437, %cst_145 {dimension_numbers = #tpu.dot_dimension_numbers<[1], [0], [0], [1], [0, 0, 1, 1], [], []>} : vector<8x32xf32>, vector<32x32xf32>, vector<8x32xf32> -> vector<8x32xf32>
    %c0_146 = arith.constant 0 : index
    %c0_147 = arith.constant 0 : index
    %439 = vector.load %arg8[%c0_146, %c0_147] : memref<1x32xf32, #tpu.memory_space<vmem>>, vector<1x32xf32>
    %440 = vector.broadcast %439 : vector<1x32xf32> to vector<8x32xf32>
    %441 = arith.addf %438, %440 : vector<8x32xf32>
    %cst_148 = arith.constant dense<0xFF800000> : vector<8xf32>
    %442 = vector.multi_reduction <maximumf>, %441, %cst_148 [1] : vector<8x32xf32> to vector<8xf32>
    %443 = vector.shape_cast %442 : vector<8xf32> to vector<8x1xf32>
    %444 = vector.broadcast %443 : vector<8x1xf32> to vector<8x32xf32>
    %445 = arith.subf %441, %444 : vector<8x32xf32>
    %446 = math.exp %445 : vector<8x32xf32>
    %cst_149 = arith.constant dense<0.000000e+00> : vector<8xf32>
    %447 = vector.multi_reduction <add>, %446, %cst_149 [1] : vector<8x32xf32> to vector<8xf32>
    %448 = vector.shape_cast %447 : vector<8xf32> to vector<8x1xf32>
    %449 = tpu.reciprocal %448 {approx = true} : vector<8x1xf32> -> vector<8x1xf32>
    %450 = vector.broadcast %449 : vector<8x1xf32> to vector<8x32xf32>
    %451 = arith.mulf %446, %450 : vector<8x32xf32>
    %c0_150 = arith.constant 0 : index
    %c0_151 = arith.constant 0 : index
    %452 = vector.load %arg9[%c0_150, %c0_151] : memref<8x32xf32, #tpu.memory_space<vmem>>, vector<8x32xf32>
    tpu.vector_store %arg9[%c0_150, %c0_151], %451 {strides = array<i32>} : memref<8x32xf32, #tpu.memory_space<vmem>>, vector<8x32xf32>,
    return
  }
}

</mosaic_0001>

<bundles_post_ra>
// kernel: text_generation_forward.1
= control target key start
LH: loop header
LB: loop body
LE: loop exit
PB: predicated region body
PF: predicated region fallthrough
CT: control target
= control target key end

     0   :  { %v2202_v2 = vmov 0.0   ;;  %vm61_vm0 = vcmask 261120   ;;  %vm2203_vm1 = vmmov 0   ;;  %v2204_v15 = vmov 0   ;;  %s2205_s18 = smov 32   ;;  %s2746_s1 = inlined_call_operand.vmem [shape: f32[32,128], index: 1, kind: input, shape index: {}]   ;;  %s2747_s2 = inlined_call_operand.vmem [shape: f32[32,128], index: 2, kind: input, shape index: {}]   ;;  %s2748_s0 = inlined_call_operand.vmem [shape: f32[64,32], index: 0, kind: input, shape index: {}]   ;;  %s2749_s3 = inlined_call_operand.vmem [shape: f32[1,128], index: 3, kind: input, shape index: {}]   ;;  %s2750_s4 = inlined_call_operand.vmem [shape: f32[32,128], index: 4, kind: input, shape index: {}]   ;;  %s2751_s5 = inlined_call_operand.vmem [shape: f32[32,128], index: 5, kind: input, shape index: {}]   ;;  %s2752_s6 = inlined_call_operand.vmem [shape: f32[1,128], index: 6, kind: input, shape index: {}]   ;;  %s2753_s10 = inlined_call_operand.vmem [shape: f32[2,8,32], index: 10, kind: output, shape index: {1}]   ;;  %s2754_s7 = inlined_call_operand.vmem [shape: f32[32,32], index: 7, kind: input, shape index: {}]   ;;  %s2755_s11 = inlined_call_operand.vmem [shape: f32[2,8,32], index: 11, kind: output, shape index: {2}]   ;;  %s2756_s8 = inlined_call_operand.vmem [shape: f32[1,32], index: 8, kind: input, shape index: {}]   ;;  %s2757_s9 = inlined_call_operand.vmem [shape: f32[8,32], index: 9, kind: output, shape index: {0}]  }
   0x1   :  { %v36_v0 = vld [vmem:[%s2746_s1] sm:$0xff]  ;;  %v37_v1 = vld [vmem:[%s2746_s1 + $0x8] sm:$0xff]  ;;  %1882 = vmatprep.subr.bf16.mxu1 %v2202_v2  ;;  %1886 = vmatprep.mubr.msk.bf16.mxu1 %vm2203_vm1, %v2202_v2  ;;  %v38_v6 = vld [vmem:[%s2746_s1 + $0x10] sm:$0xff] }
   0x2   :  { %v40_v3 = vld [vmem:[%s2747_s2] sm:$0xff]  ;;  %v2041_v4 = vpack.c.bf16 %v37_v1, %v36_v0  ;;  %v41_v5 = vld [vmem:[%s2747_s2 + $0x8] sm:$0xff]  ;;  %v39_v7 = vld [vmem:[%s2746_s1 + $0x18] sm:$0xff] }
   0x3   :  { %v2290_v8 = vpack.c.bf16 %v41_v5, %v40_v3  ;;  %v2045_v9 = vpack.c.bf16 %v39_v7, %v38_v6  ;;  %v42_v10 = vld [vmem:[%s2747_s2 + $0x10] sm:$0xff]  ;;  %v43_v11 = vld [vmem:[%s2747_s2 + $0x18] sm:$0xff]  ;;  %v47_v12 = vld [vmem:[%s2748_s0] sm:$0xff] }
   0x4   :  { %2042 = vmatprep.subr.bf16.mxu0 %v2041_v4  ;;  %1870 = vmatprep.mubr.msk.f32.mxu0 %vm61_vm0, %v47_v12  ;;  %v2303_v13 = vpack.c.bf16 %v43_v11, %v42_v10  ;;  %v48_v14 = vld [vmem:[%s2748_s0 + $0x8] sm:$0xff]  ;;  %v2327_v16 = vld [vmem:[%s2749_s3] ss:$0 sm:$0xff]  ;;  %s2206_s3 = smov 64   ;;  %v49_v56 = vld [vmem:[%s2748_s0 + $0x10] sm:$0xff] }
   0x5   :  { %2044 = vmatpush3.bf16.msra.mxu0 %v2041_v4  ;;  %1883 = vmatpush3.bf16.msra.mxu1 %v2290_v8  ;;  %v50_v57 = vld [vmem:[%s2748_s0 + $0x18] sm:$0xff]  ;;  %v51_v58 = vld [vmem:[%s2748_s0 + $0x20] sm:$0xff]  ;;  %v52_v59 = vld [vmem:[%s2748_s0 + $0x28] sm:$0xff] }
   0x6   :  { %2046 = vmatprep.subr.bf16.mxu0 %v2045_v9  ;;  %1884 = vmatprep.subr.bf16.mxu1 %v2202_v2  ;;  %v53_v60 = vld [vmem:[%s2748_s0 + $0x30] sm:$0xff]  ;;  %v54_v61 = vld [vmem:[%s2748_s0 + $0x38] sm:$0xff] }
   0x9   :  { %2048 = vmatpush3.bf16.msra.mxu0 %v2045_v9  ;;  %1885 = vmatpush3.bf16.msra.mxu1 %v2303_v13 }
   0xa   :  { %1890 = vmatprep.subr.bf16.mxu1 %v2202_v2  ;;  %1898 = vmatprep.subr.bf16.mxu0 %v2202_v2 }
   0xc   :  { %1871 = vmatmul.mubr.msk.f32.vlgmr.msra.gmra.mrb[0].mxu0 %vm61_vm0, %v48_v14  ;;  %1887 = vmatmul.mubr.bf16.vlgmr.msra.gmra.mrb[0].mxu1 %v2204_v15 }
   0xd   :  { %1891 = vmatpush3.bf16.msra.mxu1 %v2290_v8  ;;  %1894 = vmatprep.mubr.msk.bf16.mxu1 %vm2203_vm1, %v2202_v2 }
   0xe   :  { %1892 = vmatprep.subr.bf16.mxu1 %v2202_v2  ;;  %1899 = vmatpush3.bf16.msra.mxu0 %v2290_v8 }
   0xf   :  { %1900 = vmatprep.subr.bf16.mxu0 %v2202_v2  ;;  %1873 = vmatprep.mubr.msk.f32.mxu0 %vm61_vm0, %v49_v56 }
  0x10   :  { %1874 = vmatmul.mubr.msk.f32.gmra.mrb[2].mxu0 %vm61_vm0, %v50_v57 }
  0x11   :  { %1893 = vmatpush3.bf16.msra.mxu1 %v2303_v13  ;;  %1876 = vmatprep.mubr.msk.f32.mxu0 %vm61_vm0, %v51_v58 }
  0x12   :  { %1901 = vmatpush3.bf16.msra.mxu0 %v2303_v13  ;;  %1906 = vmatprep.subr.bf16.mxu1 %v2202_v2 }
  0x13   :  { %1914 = vmatprep.subr.bf16.mxu0 %v2202_v2 }
  0x14   :  { %1877 = vmatmul.mubr.msk.f32.gmra.mrb[4].mxu0 %vm61_vm0, %v52_v59 }
  0x15   :  { %1879 = vmatprep.mubr.msk.f32.mxu0 %vm61_vm0, %v53_v60 }
  0x18   :  { %1880 = vmatmul.mubr.msk.f32.gmra.mrb[6].mxu0 %vm61_vm0, %v54_v61 }
  0x19   :  { %1902 = vmatprep.mubr.msk.bf16.mxu0 %vm2203_vm1, %v2202_v2 }
  0xdf   :  { %v1872_v17 = vpop.f32.mrb[0].mxu0  ;;  %v237_v18 = vpop.f32.mrb[0].mxu1 }
  0xe0   :  { %v152_v19 = vpop.f32.mrb[1].mxu0  ;;  %v1888_v20 = vpop.f32.mrb[1].mxu1  ;;  %v158_v40 = vadd.f32 %v1872_v17, %v2327_v16 }
  0xe1   :  { %v153_v21 = vadd.f32 %v2327_v16, %v152_v19  ;;  %v240_v22 = vpop.f32.mrb[2].mxu1 }
  0xe2   :  { %v1889_v23 = vpop.f32.mrb[3].mxu1 }
  0xe3   :  { %v243_v24 = vadd.f32 %v237_v18, %v153_v21  ;;  %v1875_v3 = vpop.f32.mrb[2].mxu0 }
  0xe4   :  { %v162_v4 = vpop.f32.mrb[3].mxu0 }
  0xe5   :  { %2070 = vtanh.f32 %v243_v24  ;;  %v1742_v26 = vmul.f32 -1.442695, %v243_v24  ;;  %v163_v11 = vadd.f32 %v2327_v16, %v162_v4 }
  0xe7   :  { %2072 = vpow2.f32 %v1742_v26  ;;  %v2380_v5 = vpop.f32.mrb[4].mxu0 }
  0xe8   :  { %v2382_v6 = vpop.f32.mrb[5].mxu0 }
  0xe9   :  { %v173_v57 = vadd.f32 %v2327_v16, %v2382_v6 }
  0xeb   :  { %v2384_v7 = vpop.f32.mrb[6].mxu0 }
  0xec   :  { %v2386_v9 = vpop.f32.mrb[7].mxu0 }
  0xef   :  { %v2071_v25 = vpop.eup %2070 }
  0xf0   :  { %253 = vrot.lane.b32.xlu0 %v2071_v25, %s2205_s18 }
  0xf1   :  { %v2073_v27 = vpop.eup %2072 }
  0xf2   :  { %v247_v28 = vadd.f32 1.0, %v2073_v27 }
  0xf4   :  { %2074 = vrcp.f32 %v247_v28 }
  0xfe   :  { %v2075_v29 = vpop.eup %2074 }
  0xff   :  { %v251_v32 = vmul.f32 0.0, %v2075_v29 }
 0x162   :  { %v254_v30 = vpop.permute.xlu0 %253 }
 0x163   :  { %v256_v31 = vmul.f32 %v2075_v29, %v254_v30 }
 0x165   :  { %258 = vrot.lane.b32.xlu0 %v256_v31, %s2205_s18 }
 0x1d7   :  { %v259_v33 = vpop.permute.xlu0 %258 }
 0x1d8   :  { %v261_v34 = vadd.f32 %v259_v33, %v251_v32 }
 0x1da   :  { %2076 = vtanh.f32 %v261_v34 }
 0x1e4   :  { %v2077_v35 = vpop.eup %2076 }
 0x1e5   :  { %264 = vrot.lane.b32.xlu1 %v2077_v35, %s2205_s18  ;;  %v168_v35 = vadd.f32 %v1875_v3, %v2327_v16 }
 0x257   :  { %v265_v36 = vpop.permute.xlu1 %264 }
 0x258   :  { %v2333_v37 = vmul.f32 %v2075_v29, %v265_v36 }
 0x25a   :  { %v275_v38 = vpack.c.bf16 %v2333_v37, %v2333_v37 }
 0x25c   :  { %277 = vrot.lane.b32.xlu1 %v275_v38, %s2206_s3 }
 0x2ce   :  { %v278_v39 = vpop.permute.xlu1 %277 }
 0x2cf   :  { %1895 = vmatmul.mubr.msk.bf16.vlgmr.msra.gmra.mrb[4].mxu1 %vm61_vm0, %v278_v39 }
 0x2d0   :  { %1907 = vmatpush3.bf16.msra.mxu1 %v2290_v8  ;;  %1910 = vmatprep.mubr.msk.bf16.mxu1 %vm2203_vm1, %v2202_v2 }
 0x2d1   :  { %1908 = vmatprep.subr.bf16.mxu1 %v2202_v2 }
 0x2d4   :  { %1909 = vmatpush3.bf16.msra.mxu1 %v2303_v13 }
 0x2d5   :  { %1922 = vmatprep.subr.bf16.mxu1 %v2202_v2 }
 0x3a2   :  { %v316_v41 = vpop.f32.mrb[4].mxu1 }
 0x3a3   :  { %v322_v42 = vadd.f32 %v316_v41, %v158_v40  ;;  %v1896_v43 = vpop.f32.mrb[5].mxu1 }
 0x3a4   :  { %v319_v44 = vpop.f32.mrb[6].mxu1 }
 0x3a5   :  { %2078 = vtanh.f32 %v322_v42  ;;  %v1897_v45 = vpop.f32.mrb[7].mxu1  ;;  %v1744_v47 = vmul.f32 -1.442695, %v322_v42 }
 0x3a7   :  { %2080 = vpow2.f32 %v1744_v47 }
 0x3af   :  { %v2079_v46 = vpop.eup %2078 }
 0x3b0   :  { %332 = vrot.lane.b32.xlu0 %v2079_v46, %s2205_s18 }
 0x3b1   :  { %v2081_v48 = vpop.eup %2080 }
 0x3b2   :  { %v326_v49 = vadd.f32 1.0, %v2081_v48 }
 0x3b4   :  { %2082 = vrcp.f32 %v326_v49 }
 0x3be   :  { %v2083_v50 = vpop.eup %2082 }
 0x3bf   :  { %v330_v53 = vmul.f32 %v2083_v50, %v261_v34 }
 0x422   :  { %v333_v51 = vpop.permute.xlu0 %332 }
 0x423   :  { %v335_v52 = vmul.f32 %v2083_v50, %v333_v51 }
 0x425   :  { %337 = vrot.lane.b32.xlu1 %v335_v52, %s2205_s18 }
 0x497   :  { %v338_v54 = vpop.permute.xlu1 %337 }
 0x498   :  { %v340_v55 = vadd.f32 %v338_v54, %v330_v53 }
 0x49a   :  { %2084 = vtanh.f32 %v340_v55 }
 0x4a4   :  { %v2085_v62 = vpop.eup %2084 }
 0x4a5   :  { %343 = vrot.lane.b32.xlu0 %v2085_v62, %s2205_s18 }
 0x517   :  { %v344_v63 = vpop.permute.xlu0 %343 }
 0x518   :  { %v2375_v0 = vmul.f32 %v2083_v50, %v344_v63 }
 0x51a   :  { %v355_v1 = vpack.c.bf16 %v2375_v0, %v2375_v0 }
 0x51c   :  { %357 = vrot.lane.b32.xlu1 %v355_v1, %s2206_s3 }
 0x58e   :  { %v358_v10 = vpop.permute.xlu1 %357 }
 0x58f   :  { %1903 = vmatmul.mubr.msk.bf16.vlgmr.msra.gmra.mrb[8].mxu0 %vm61_vm0, %v358_v10 }
 0x590   :  { %1915 = vmatpush3.bf16.msra.mxu0 %v2290_v8  ;;  %1918 = vmatprep.mubr.msk.bf16.mxu0 %vm2203_vm1, %v2202_v2 }
 0x591   :  { %1916 = vmatprep.subr.bf16.mxu0 %v2202_v2 }
 0x594   :  { %1917 = vmatpush3.bf16.msra.mxu0 %v2303_v13 }
 0x595   :  { %1930 = vmatprep.subr.bf16.mxu0 %v2202_v2 }
 0x662   :  { %v396_v12 = vpop.f32.mrb[8].mxu0 }
 0x663   :  { %v402_v14 = vadd.f32 %v396_v12, %v163_v11  ;;  %v1904_v17 = vpop.f32.mrb[9].mxu0 }
 0x664   :  { %v399_v18 = vpop.f32.mrb[10].mxu0 }
 0x665   :  { %2086 = vtanh.f32 %v402_v14  ;;  %v1905_v19 = vpop.f32.mrb[11].mxu0  ;;  %v1746_v21 = vmul.f32 -1.442695, %v402_v14 }
 0x667   :  { %2088 = vpow2.f32 %v1746_v21 }
 0x66f   :  { %v2087_v20 = vpop.eup %2086 }
 0x670   :  { %412 = vrot.lane.b32.xlu0 %v2087_v20, %s2205_s18 }
 0x671   :  { %v2089_v22 = vpop.eup %2088 }
 0x672   :  { %v406_v23 = vadd.f32 1.0, %v2089_v22 }
 0x674   :  { %2090 = vrcp.f32 %v406_v23  ;;  %v178_v23 = vadd.f32 %v2380_v5, %v2327_v16 }
 0x67e   :  { %v2091_v24 = vpop.eup %2090 }
 0x67f   :  { %v410_v27 = vmul.f32 %v2091_v24, %v340_v55 }
 0x6e2   :  { %v413_v25 = vpop.permute.xlu0 %412 }
 0x6e3   :  { %v415_v26 = vmul.f32 %v2091_v24, %v413_v25 }
 0x6e5   :  { %417 = vrot.lane.b32.xlu1 %v415_v26, %s2205_s18 }
 0x757   :  { %v418_v28 = vpop.permute.xlu1 %417 }
 0x758   :  { %v420_v29 = vadd.f32 %v418_v28, %v410_v27 }
 0x75a   :  { %2092 = vtanh.f32 %v420_v29 }
 0x764   :  { %v2093_v30 = vpop.eup %2092 }
 0x765   :  { %423 = vrot.lane.b32.xlu0 %v2093_v30, %s2205_s18 }
 0x7d7   :  { %v424_v31 = vpop.permute.xlu0 %423 }
 0x7d8   :  { %v2399_v32 = vmul.f32 %v2091_v24, %v424_v31 }
 0x7da   :  { %v435_v33 = vpack.c.bf16 %v2399_v32, %v2399_v32 }
 0x7dc   :  { %437 = vrot.lane.b32.xlu1 %v435_v33, %s2206_s3 }
 0x84e   :  { %v438_v34 = vpop.permute.xlu1 %437 }
 0x84f   :  { %1911 = vmatmul.mubr.msk.bf16.vlgmr.msra.gmra.mrb[8].mxu1 %vm61_vm0, %v438_v34 }
 0x850   :  { %1923 = vmatpush3.bf16.msra.mxu1 %v2290_v8  ;;  %1926 = vmatprep.mubr.msk.bf16.mxu1 %vm2203_vm1, %v2202_v2 }
 0x851   :  { %1924 = vmatprep.subr.bf16.mxu1 %v2202_v2 }
 0x854   :  { %1925 = vmatpush3.bf16.msra.mxu1 %v2303_v13 }
 0x855   :  { %1938 = vmatprep.subr.bf16.mxu1 %v2202_v2 }
 0x922   :  { %v476_v36 = vpop.f32.mrb[8].mxu1 }
 0x923   :  { %v482_v38 = vadd.f32 %v476_v36, %v168_v35  ;;  %v1912_v39 = vpop.f32.mrb[9].mxu1 }
 0x924   :  { %v479_v40 = vpop.f32.mrb[10].mxu1 }
 0x925   :  { %2094 = vtanh.f32 %v482_v38  ;;  %v1913_v41 = vpop.f32.mrb[11].mxu1  ;;  %v1748_v43 = vmul.f32 -1.442695, %v482_v38 }
 0x927   :  { %2096 = vpow2.f32 %v1748_v43  ;;  %v183_v43 = vadd.f32 %v2327_v16, %v2386_v9 }
 0x92f   :  { %v2095_v42 = vpop.eup %2094 }
 0x930   :  { %492 = vrot.lane.b32.xlu0 %v2095_v42, %s2205_s18 }
 0x931   :  { %v2097_v44 = vpop.eup %2096 }
 0x932   :  { %v486_v45 = vadd.f32 1.0, %v2097_v44 }
 0x934   :  { %2098 = vrcp.f32 %v486_v45 }
 0x93e   :  { %v2099_v46 = vpop.eup %2098 }
 0x93f   :  { %v490_v49 = vmul.f32 %v2099_v46, %v420_v29 }
 0x9a2   :  { %v493_v47 = vpop.permute.xlu0 %492 }
 0x9a3   :  { %v495_v48 = vmul.f32 %v2099_v46, %v493_v47 }
 0x9a5   :  { %497 = vrot.lane.b32.xlu1 %v495_v48, %s2205_s18 }
 0xa17   :  { %v498_v50 = vpop.permute.xlu1 %497 }
 0xa18   :  { %v500_v51 = vadd.f32 %v498_v50, %v490_v49 }
 0xa1a   :  { %2100 = vtanh.f32 %v500_v51 }
 0xa24   :  { %v2101_v52 = vpop.eup %2100 }
 0xa25   :  { %503 = vrot.lane.b32.xlu0 %v2101_v52, %s2205_s18 }
 0xa97   :  { %v504_v53 = vpop.permute.xlu0 %503 }
 0xa98   :  { %v2415_v54 = vmul.f32 %v2099_v46, %v504_v53 }
 0xa9a   :  { %v515_v55 = vpack.c.bf16 %v2415_v54, %v2415_v54 }
 0xa9c   :  { %517 = vrot.lane.b32.xlu1 %v515_v55, %s2206_s3 }
 0xb0e   :  { %v518_v56 = vpop.permute.xlu1 %517 }
 0xb0f   :  { %1919 = vmatmul.mubr.msk.bf16.vlgmr.msra.gmra.mrb[12].mxu0 %vm61_vm0, %v518_v56 }
 0xb10   :  { %1931 = vmatpush3.bf16.msra.mxu0 %v2290_v8  ;;  %1934 = vmatprep.mubr.msk.bf16.mxu0 %vm2203_vm1, %v2202_v2 }
 0xb11   :  { %1932 = vmatprep.subr.bf16.mxu0 %v2202_v2 }
 0xb14   :  { %1933 = vmatpush3.bf16.msra.mxu0 %v2303_v13 }
 0xbe2   :  { %v556_v58 = vpop.f32.mrb[12].mxu0 }
 0xbe3   :  { %v562_v59 = vadd.f32 %v556_v58, %v173_v57  ;;  %v1920_v60 = vpop.f32.mrb[13].mxu0 }
 0xbe4   :  { %v559_v61 = vpop.f32.mrb[14].mxu0  ;;  %v840_v60 = vld [vmem:[%s2750_s4 + $0x8] sm:$0xff] }
 0xbe5   :  { %2102 = vtanh.f32 %v562_v59  ;;  %v1921_v62 = vpop.f32.mrb[15].mxu0  ;;  %v1750_v1 = vmul.f32 -1.442695, %v562_v59  ;;  %v839_v59 = vld [vmem:[%s2750_s4] sm:$0xff] }
 0xbe6   :  { %v2049_v61 = vpack.c.bf16 %v840_v60, %v839_v59 }
 0xbe7   :  { %2104 = vpow2.f32 %v1750_v1 }
 0xbe8   :  { %2050 = vmatprep.subr.bf16.mxu0 %v2049_v61 }
 0xbef   :  { %v2103_v63 = vpop.eup %2102 }
 0xbf0   :  { %572 = vrot.lane.b32.xlu0 %v2103_v63, %s2205_s18  ;;  %v842_v63 = vld [vmem:[%s2750_s4 + $0x18] sm:$0xff] }
 0xbf1   :  { %v2105_v3 = vpop.eup %2104 }
 0xbf2   :  { %v566_v4 = vadd.f32 1.0, %v2105_v3 }
 0xbf4   :  { %2106 = vrcp.f32 %v566_v4 }
 0xbfe   :  { %v2107_v10 = vpop.eup %2106 }
 0xbff   :  { %v570_v6 = vmul.f32 %v2107_v10, %v500_v51 }
 0xc62   :  { %v573_v11 = vpop.permute.xlu0 %572 }
 0xc63   :  { %v575_v12 = vmul.f32 %v2107_v10, %v573_v11 }
 0xc65   :  { %577 = vrot.lane.b32.xlu1 %v575_v12, %s2205_s18 }
 0xcd7   :  { %v578_v14 = vpop.permute.xlu1 %577 }
 0xcd8   :  { %v580_v17 = vadd.f32 %v578_v14, %v570_v6  ;;  %v843_v14 = vld [vmem:[%s2751_s5] sm:$0xff] }
 0xcda   :  { %2108 = vtanh.f32 %v580_v17 }
 0xce4   :  { %v2109_v18 = vpop.eup %2108 }
 0xce5   :  { %583 = vrot.lane.b32.xlu0 %v2109_v18, %s2205_s18 }
 0xd57   :  { %v584_v19 = vpop.permute.xlu0 %583 }
 0xd58   :  { %v2431_v20 = vmul.f32 %v2107_v10, %v584_v19  ;;  %v845_v19 = vld [vmem:[%s2751_s5 + $0x10] sm:$0xff] }
 0xd5a   :  { %v595_v21 = vpack.c.bf16 %v2431_v20, %v2431_v20 }
 0xd5c   :  { %597 = vrot.lane.b32.xlu1 %v595_v21, %s2206_s3  ;;  %v846_v21 = vld [vmem:[%s2751_s5 + $0x18] sm:$0xff] }
 0xdce   :  { %v598_v22 = vpop.permute.xlu1 %597 }
 0xdcf   :  { %1927 = vmatmul.mubr.msk.bf16.vlgmr.msra.gmra.mrb[12].mxu1 %vm61_vm0, %v598_v22  ;;  %v2504_v22 = vpack.c.bf16 %v846_v21, %v845_v19 }
 0xdd0   :  { %1939 = vmatpush3.bf16.msra.mxu1 %v2290_v8  ;;  %1942 = vmatprep.mubr.msk.bf16.mxu1 %vm2203_vm1, %v2202_v2 }
 0xdd1   :  { %1940 = vmatprep.subr.bf16.mxu1 %v2202_v2 }
 0xdd4   :  { %1941 = vmatpush3.bf16.msra.mxu1 %v2303_v13 }
 0xdd5   :  { %1966 = vmatprep.subr.bf16.mxu1 %v2202_v2 }
 0xea2   :  { %v636_v24 = vpop.f32.mrb[12].mxu1 }
 0xea3   :  { %v642_v25 = vadd.f32 %v636_v24, %v178_v23  ;;  %v1928_v26 = vpop.f32.mrb[13].mxu1 }
 0xea4   :  { %v639_v27 = vpop.f32.mrb[14].mxu1  ;;  %v188_v26 = vadd.f32 %v2384_v7, %v2327_v16 }
 0xea5   :  { %2110 = vtanh.f32 %v642_v25  ;;  %v1929_v28 = vpop.f32.mrb[15].mxu1  ;;  %v1752_v8 = vmul.f32 -1.442695, %v642_v25 }
 0xea7   :  { %2112 = vpow2.f32 %v1752_v8 }
 0xeaf   :  { %v2111_v29 = vpop.eup %2110 }
 0xeb0   :  { %652 = vrot.lane.b32.xlu0 %v2111_v29, %s2205_s18 }
 0xeb1   :  { %v2113_v30 = vpop.eup %2112 }
 0xeb2   :  { %v646_v31 = vadd.f32 1.0, %v2113_v30  ;;  %v2529_v30 = vld [vmem:[%s2752_s6] ss:$0 sm:$0xff] }
 0xeb4   :  { %2114 = vrcp.f32 %v646_v31 }
 0xebe   :  { %v2115_v13 = vpop.eup %2114 }
 0xebf   :  { %v650_v5 = vmul.f32 %v2115_v13, %v580_v17  ;;  %v844_v17 = vld [vmem:[%s2751_s5 + $0x8] sm:$0xff] }
 0xec0   :  { %v2493_v18 = vpack.c.bf16 %v844_v17, %v843_v14 }
 0xf22   :  { %v653_v33 = vpop.permute.xlu0 %652 }
 0xf23   :  { %v655_v34 = vmul.f32 %v2115_v13, %v653_v33 }
 0xf25   :  { %657 = vrot.lane.b32.xlu1 %v655_v34, %s2205_s18 }
 0xf97   :  { %v658_v35 = vpop.permute.xlu1 %657 }
 0xf98   :  { %v660_v36 = vadd.f32 %v658_v35, %v650_v5 }
 0xf9a   :  { %2116 = vtanh.f32 %v660_v36 }
 0xfa4   :  { %v2117_v38 = vpop.eup %2116 }
 0xfa5   :  { %663 = vrot.lane.b32.xlu0 %v2117_v38, %s2205_s18 }
0x1017   :  { %v664_v39 = vpop.permute.xlu0 %663 }
0x1018   :  { %v2448_v40 = vmul.f32 %v2115_v13, %v664_v39 }
0x101a   :  { %v675_v41 = vpack.c.bf16 %v2448_v40, %v2448_v40 }
0x101c   :  { %677 = vrot.lane.b32.xlu1 %v675_v41, %s2206_s3 }
0x108e   :  { %v678_v42 = vpop.permute.xlu1 %677 }
0x108f   :  { %1935 = vmatmul.mubr.msk.bf16.vlgmr.msra.gmra.mrb[16].mxu0 %vm61_vm0, %v678_v42 }
0x1090   :  { %2052 = vmatpush3.bf16.msra.mxu0 %v2049_v61 }
0x1162   :  { %v716_v44 = vpop.f32.mrb[16].mxu0 }
0x1163   :  { %v722_v45 = vadd.f32 %v716_v44, %v183_v43  ;;  %v1936_v46 = vpop.f32.mrb[17].mxu0 }
0x1164   :  { %v719_v47 = vpop.f32.mrb[18].mxu0 }
0x1165   :  { %2118 = vtanh.f32 %v722_v45  ;;  %v1937_v48 = vpop.f32.mrb[19].mxu0  ;;  %v1754_v50 = vmul.f32 -1.442695, %v722_v45 }
0x1167   :  { %2120 = vpow2.f32 %v1754_v50 }
0x116f   :  { %v2119_v49 = vpop.eup %2118 }
0x1170   :  { %732 = vrot.lane.b32.xlu0 %v2119_v49, %s2205_s18 }
0x1171   :  { %v2121_v51 = vpop.eup %2120 }
0x1172   :  { %v726_v52 = vadd.f32 1.0, %v2121_v51 }
0x1174   :  { %2122 = vrcp.f32 %v726_v52 }
0x117e   :  { %v2123_v53 = vpop.eup %2122 }
0x117f   :  { %v730_v9 = vmul.f32 %v2123_v53, %v660_v36 }
0x11e2   :  { %v733_v55 = vpop.permute.xlu0 %732 }
0x11e3   :  { %v735_v56 = vmul.f32 %v2123_v53, %v733_v55 }
0x11e5   :  { %737 = vrot.lane.b32.xlu1 %v735_v56, %s2205_s18 }
0x11e9   :  { %269 = vrot.lane.b32.xlu1 %v2333_v37, %s2206_s3  ;;  %v841_v37 = vld [vmem:[%s2750_s4 + $0x10] sm:$0xff] }
0x11ea   :  { %v2053_v1 = vpack.c.bf16 %v842_v63, %v841_v37 }
0x11ec   :  { %2054 = vmatprep.subr.bf16.mxu0 %v2053_v1 }
0x11ed   :  { %2056 = vmatpush3.bf16.msra.mxu0 %v2053_v1 }
0x11ee   :  { %1982 = vmatprep.subr.bf16.mxu0 %v2202_v2 }
0x1257   :  { %v738_v57 = vpop.permute.xlu1 %737 }
0x1258   :  { %v2460_v58 = vadd.f32 %v738_v57, %v730_v9 }
0x125a   :  { %2124 = vtanh.f32 %v2460_v58 }
0x125b   :  { %v270_v62 = vpop.permute.xlu1 %269 }
0x125c   :  { %272 = vst.msk [vmem:[#allocation3] sm:$0xff] %vm61_vm0, %v270_v62 }
0x1263   :  { %v850_v3 = vld [vmem:[#allocation3] sm:$0xff] }
0x1264   :  { %v2125_v4 = vpop.eup %2124  ;;  %1954 = vmatprep.mubr.msk.f32.mxu0 %vm61_vm0, %v850_v3 }
0x1265   :  { %743 = vrot.lane.b32.xlu0 %v2125_v4, %s2205_s18 }
0x1269   :  { %348 = vrot.lane.b32.xlu0 %v2375_v0, %s2206_s3 }
0x12d7   :  { %v744_v10 = vpop.permute.xlu0 %743 }
0x12d8   :  { %v2481_v11 = vmul.f32 %v2123_v53, %v744_v10 }
0x12da   :  { %v755_v12 = vpack.c.bf16 %v2481_v11, %v2481_v11 }
0x12db   :  { %v349_v6 = vpop.permute.xlu0 %348 }
0x12dc   :  { %352 = vst.msk [vmem:[#allocation3 + $0x8] sm:$0xff] %vm61_vm0, %v349_v6  ;;  %757 = vrot.lane.b32.xlu1 %v755_v12, %s2206_s3 }
0x12e3   :  { %v851_v0 = vld [vmem:[#allocation3 + $0x8] sm:$0xff] }
0x12e4   :  { %1955 = vmatmul.mubr.msk.f32.vlgmr.msra.gmra.mrb[20].mxu0 %vm61_vm0, %v851_v0 }
0x12e5   :  { %1983 = vmatpush3.bf16.msra.mxu0 %v2493_v18 }
0x12e6   :  { %1984 = vmatprep.subr.bf16.mxu0 %v2202_v2 }
0x12e9   :  { %1985 = vmatpush3.bf16.msra.mxu0 %v2504_v22 }
0x12ea   :  { %1998 = vmatprep.subr.bf16.mxu0 %v2202_v2 }
0x134e   :  { %v758_v23 = vpop.permute.xlu1 %757 }
0x134f   :  { %1943 = vmatmul.mubr.msk.bf16.vlgmr.msra.gmra.mrb[16].mxu1 %vm61_vm0, %v758_v23 }
0x1350   :  { %1967 = vmatpush3.bf16.msra.mxu1 %v2493_v18  ;;  %1970 = vmatprep.mubr.msk.bf16.mxu1 %vm2203_vm1, %v2202_v2 }
0x1351   :  { %1968 = vmatprep.subr.bf16.mxu1 %v2202_v2 }
0x1354   :  { %1969 = vmatpush3.bf16.msra.mxu1 %v2504_v22 }
0x1355   :  { %1974 = vmatprep.subr.bf16.mxu1 %v2202_v2 }
0x1357   :  { %1971 = vmatmul.mubr.bf16.vlgmr.msra.gmra.mrb[20].mxu1 %v2204_v15 }
0x1358   :  { %1975 = vmatpush3.bf16.msra.mxu1 %v2493_v18  ;;  %1978 = vmatprep.mubr.msk.bf16.mxu1 %vm2203_vm1, %v2202_v2 }
0x1359   :  { %1976 = vmatprep.subr.bf16.mxu1 %v2202_v2 }
0x135c   :  { %1977 = vmatpush3.bf16.msra.mxu1 %v2504_v22 }
0x135d   :  { %1990 = vmatprep.subr.bf16.mxu1 %v2202_v2 }
0x13b7   :  { %v2522_v24 = vpop.f32.mrb[20].mxu0 }
0x13b8   :  { %v954_v25 = vpop.f32.mrb[21].mxu0 }
0x13b9   :  { %v955_v31 = vadd.f32 %v2529_v30, %v954_v25 }
0x1422   :  { %v796_v27 = vpop.f32.mrb[16].mxu1 }
0x1423   :  { %v802_v28 = vadd.f32 %v796_v27, %v188_v26  ;;  %v1944_v15 = vpop.f32.mrb[17].mxu1 }
0x1424   :  { %v799_v29 = vpop.f32.mrb[18].mxu1 }
0x1425   :  { %v1945_v8 = vpop.f32.mrb[19].mxu1  ;;  %v1756_v48 = vmul.f32 -1.442695, %v802_v28 }
0x142a   :  { %v1036_v13 = vpop.f32.mrb[20].mxu1 }
0x142b   :  { %v1042_v33 = vadd.f32 %v1036_v13, %v955_v31  ;;  %v1972_v34 = vpop.f32.mrb[21].mxu1 }
0x142c   :  { %v1039_v5 = vpop.f32.mrb[22].mxu1 }
0x142d   :  { %2126 = vtanh.f32 %v1042_v33  ;;  %v1973_v35 = vpop.f32.mrb[23].mxu1  ;;  %v1766_v16 = vmul.f32 -1.442695, %v1042_v33 }
0x142f   :  { %2128 = vpow2.f32 %v1766_v16 }
0x1437   :  { %v2127_v36 = vpop.eup %2126 }
0x1438   :  { %1052 = vrot.lane.b32.xlu0 %v2127_v36, %s2205_s18 }
0x1439   :  { %v2129_v7 = vpop.eup %2128 }
0x143a   :  { %v1046_v38 = vadd.f32 1.0, %v2129_v7 }
0x143c   :  { %2130 = vrcp.f32 %v1046_v38 }
0x1446   :  { %v2131_v39 = vpop.eup %2130 }
0x1447   :  { %v1050_v43 = vmul.f32 0.0, %v2131_v39 }
0x14aa   :  { %v1053_v41 = vpop.permute.xlu0 %1052 }
0x14ab   :  { %v1055_v42 = vmul.f32 %v2131_v39, %v1053_v41 }
0x14ad   :  { %1057 = vrot.lane.b32.xlu1 %v1055_v42, %s2205_s18 }
0x151f   :  { %v1058_v44 = vpop.permute.xlu1 %1057 }
0x1520   :  { %v2534_v45 = vadd.f32 %v1058_v44, %v1050_v43 }
0x1522   :  { %2132 = vtanh.f32 %v2534_v45 }
0x1523   :  { %2134 = vtanh.f32 %v802_v28 }
0x1524   :  { %2136 = vpow2.f32 %v1756_v48 }
0x152c   :  { %v2133_v46 = vpop.eup %2132 }
0x152d   :  { %1063 = vrot.lane.b32.xlu0 %v2133_v46, %s2205_s18  ;;  %v2135_v47 = vpop.eup %2134 }
0x152e   :  { %v2137_v49 = vpop.eup %2136 }
0x152f   :  { %v806_v50 = vadd.f32 1.0, %v2137_v49 }
0x1531   :  { %812 = vrot.lane.b32.xlu0 %v2135_v47, %s2205_s18  ;;  %2138 = vrcp.f32 %v806_v50 }
0x153b   :  { %v2139_v55 = vpop.eup %2138 }
0x153c   :  { %v810_v59 = vmul.f32 %v2139_v55, %v2460_v58 }
0x159f   :  { %v1064_v51 = vpop.permute.xlu0 %1063 }
0x15a0   :  { %v2539_v52 = vmul.f32 %v2131_v39, %v1064_v51 }
0x15a2   :  { %v1073_v53 = vpack.c.bf16 %v2539_v52, %v2539_v52 }
0x15a3   :  { %v813_v56 = vpop.permute.xlu0 %812 }
0x15a4   :  { %v815_v9 = vmul.f32 %v2139_v55, %v813_v56  ;;  %1075 = vrot.lane.b32.xlu1 %v1073_v53, %s2206_s3 }
0x15a6   :  { %817 = vrot.lane.b32.xlu0 %v815_v9, %s2205_s18 }
0x1616   :  { %v1076_v57 = vpop.permute.xlu1 %1075 }
0x1617   :  { %1979 = vmatmul.mubr.msk.bf16.vlgmr.msra.gmra.mrb[24].mxu1 %vm61_vm0, %v1076_v57 }
0x1618   :  { %v818_v60 = vpop.permute.xlu0 %817  ;;  %1991 = vmatpush3.bf16.msra.mxu1 %v2493_v18  ;;  %1994 = vmatprep.mubr.msk.bf16.mxu1 %vm2203_vm1, %v2202_v2 }
0x1619   :  { %v2550_v61 = vadd.f32 %v818_v60, %v810_v59  ;;  %1992 = vmatprep.subr.bf16.mxu1 %v2202_v2 }
0x161b   :  { %2140 = vtanh.f32 %v2550_v61 }
0x161c   :  { %1993 = vmatpush3.bf16.msra.mxu1 %v2504_v22 }
0x161d   :  { %2006 = vmatprep.subr.bf16.mxu1 %v2202_v2 }
0x1625   :  { %v2141_v62 = vpop.eup %2140 }
0x1626   :  { %823 = vrot.lane.b32.xlu0 %v2141_v62, %s2205_s18 }
0x162a   :  { %428 = vrot.lane.b32.xlu0 %v2399_v32, %s2206_s3  ;;  %v960_v32 = vadd.f32 %v2522_v24, %v2529_v30 }
0x162e   :  { %588 = vrot.lane.b32.xlu0 %v2431_v20, %s2206_s3 }
0x1632   :  { %748 = vrot.lane.b32.xlu0 %v2481_v11, %s2206_s3 }
0x1698   :  { %v824_v58 = vpop.permute.xlu0 %823 }
0x1699   :  { %v826_v28 = vmul.f32 %v2139_v55, %v824_v58 }
0x169c   :  { %v429_v37 = vpop.permute.xlu0 %428 }
0x169d   :  { %432 = vst.msk [vmem:[#allocation3 + $0x10] sm:$0xff] %vm61_vm0, %v429_v37 }
0x16a0   :  { %v589_v63 = vpop.permute.xlu0 %588 }
0x16a1   :  { %592 = vst.msk [vmem:[#allocation3 + $0x20] sm:$0xff] %vm61_vm0, %v589_v63 }
0x16a4   :  { %v749_v1 = vpop.permute.xlu0 %748  ;;  %v852_v3 = vld [vmem:[#allocation3 + $0x10] sm:$0xff] }
0x16a5   :  { %752 = vst.msk [vmem:[#allocation3 + $0x30] sm:$0xff] %vm61_vm0, %v749_v1  ;;  %1957 = vmatprep.mubr.msk.f32.mxu0 %vm61_vm0, %v852_v3 }
0x16ac   :  { %v856_v5 = vld [vmem:[#allocation3 + $0x30] sm:$0xff] }
0x16ea   :  { %v1114_v20 = vpop.f32.mrb[24].mxu1 }
0x16eb   :  { %v1120_v4 = vadd.f32 %v1114_v20, %v960_v32  ;;  %v1980_v10 = vpop.f32.mrb[25].mxu1 }
0x16ec   :  { %v1117_v11 = vpop.f32.mrb[26].mxu1 }
0x16ed   :  { %2142 = vtanh.f32 %v1120_v4  ;;  %v1981_v12 = vpop.f32.mrb[27].mxu1  ;;  %v1768_v14 = vmul.f32 -1.442695, %v1120_v4 }
0x16ef   :  { %2144 = vpow2.f32 %v1768_v14 }
0x16f7   :  { %v2143_v6 = vpop.eup %2142 }
0x16f8   :  { %1130 = vrot.lane.b32.xlu1 %v2143_v6, %s2205_s18 }
0x16f9   :  { %v2145_v17 = vpop.eup %2144 }
0x16fa   :  { %v1124_v0 = vadd.f32 1.0, %v2145_v17 }
0x16fc   :  { %2146 = vrcp.f32 %v1124_v0 }
0x1706   :  { %v2147_v19 = vpop.eup %2146 }
0x1707   :  { %v1128_v24 = vmul.f32 %v2147_v19, %v2534_v45 }
0x176a   :  { %v1131_v21 = vpop.permute.xlu1 %1130 }
0x176b   :  { %v1133_v23 = vmul.f32 %v2147_v19, %v1131_v21 }
0x176d   :  { %1135 = vrot.lane.b32.xlu1 %v1133_v23, %s2205_s18 }
0x17df   :  { %v1136_v25 = vpop.permute.xlu1 %1135 }
0x17e0   :  { %v1138_v26 = vadd.f32 %v1136_v25, %v1128_v24 }
0x17e2   :  { %2148 = vtanh.f32 %v1138_v26 }
0x17ec   :  { %v2149_v27 = vpop.eup %2148 }
0x17ed   :  { %1141 = vrot.lane.b32.xlu1 %v2149_v27, %s2205_s18 }
0x17f1   :  { %508 = vrot.lane.b32.xlu1 %v2415_v54, %s2206_s3 }
0x17f5   :  { %668 = vrot.lane.b32.xlu1 %v2448_v40, %s2206_s3  ;;  %v854_v40 = vld [vmem:[#allocation3 + $0x20] sm:$0xff] }
0x17f9   :  { %828 = vrot.lane.b32.xlu1 %v826_v28, %s2206_s3 }
0x185f   :  { %v1142_v15 = vpop.permute.xlu1 %1141 }
0x1860   :  { %v2578_v29 = vmul.f32 %v2147_v19, %v1142_v15 }
0x1862   :  { %v1151_v8 = vpack.c.bf16 %v2578_v29, %v2578_v29 }
0x1863   :  { %v509_v31 = vpop.permute.xlu1 %508 }
0x1864   :  { %512 = vst.msk [vmem:[#allocation3 + $0x18] sm:$0xff] %vm61_vm0, %v509_v31  ;;  %1153 = vrot.lane.b32.xlu0 %v1151_v8, %s2206_s3 }
0x1867   :  { %v669_v13 = vpop.permute.xlu1 %668 }
0x1868   :  { %672 = vst.msk [vmem:[#allocation3 + $0x28] sm:$0xff] %vm61_vm0, %v669_v13 }
0x186b   :  { %v829_v54 = vpop.permute.xlu1 %828  ;;  %v853_v33 = vld [vmem:[#allocation3 + $0x18] sm:$0xff] }
0x186c   :  { %832 = vst.msk [vmem:[#allocation3 + $0x38] sm:$0xff] %vm61_vm0, %v829_v54  ;;  %833 = vst.msk [vmem:[%s2753_s10] sm:$0xff] %vm61_vm0, %v829_v54  ;;  %1958 = vmatmul.mubr.msk.f32.gmra.mrb[22].mxu0 %vm61_vm0, %v853_v33 }
0x186d   :  { %1960 = vmatprep.mubr.msk.f32.mxu0 %vm61_vm0, %v854_v40 }
0x186f   :  { %v855_v34 = vld [vmem:[#allocation3 + $0x28] sm:$0xff] }
0x1870   :  { %1961 = vmatmul.mubr.msk.f32.gmra.mrb[24].mxu0 %vm61_vm0, %v855_v34 }
0x1871   :  { %1963 = vmatprep.mubr.msk.f32.mxu0 %vm61_vm0, %v856_v5 }
0x1873   :  { %v857_v35 = vld [vmem:[#allocation3 + $0x38] sm:$0xff] }
0x1874   :  { %1964 = vmatmul.mubr.msk.f32.gmra.mrb[26].mxu0 %vm61_vm0, %v857_v35 }
0x1875   :  { %1986 = vmatprep.mubr.msk.bf16.mxu0 %vm2203_vm1, %v2202_v2 }
0x18d6   :  { %v1154_v36 = vpop.permute.xlu0 %1153 }
0x18d7   :  { %1987 = vmatmul.mubr.msk.bf16.vlgmr.msra.gmra.mrb[28].mxu0 %vm61_vm0, %v1154_v36 }
0x18d8   :  { %1999 = vmatpush3.bf16.msra.mxu0 %v2493_v18  ;;  %2002 = vmatprep.mubr.msk.bf16.mxu0 %vm2203_vm1, %v2202_v2 }
0x18d9   :  { %2000 = vmatprep.subr.bf16.mxu0 %v2202_v2 }
0x18dc   :  { %2001 = vmatpush3.bf16.msra.mxu0 %v2504_v22 }
0x18dd   :  { %2014 = vmatprep.subr.bf16.mxu0 %v2202_v2 }
0x193f   :  { %v1959_v16 = vpop.f32.mrb[22].mxu0 }
0x1940   :  { %v964_v7 = vpop.f32.mrb[23].mxu0  ;;  %v970_v3 = vadd.f32 %v1959_v16, %v2529_v30 }
0x1941   :  { %v965_v43 = vadd.f32 %v2529_v30, %v964_v7 }
0x1943   :  { %v2604_v38 = vpop.f32.mrb[24].mxu0 }
0x1944   :  { %v2606_v39 = vpop.f32.mrb[25].mxu0 }
0x1945   :  { %v975_v31 = vadd.f32 %v2529_v30, %v2606_v39 }
0x1947   :  { %v2608_v41 = vpop.f32.mrb[26].mxu0 }
0x1948   :  { %v2610_v42 = vpop.f32.mrb[27].mxu0 }
0x19aa   :  { %v1192_v44 = vpop.f32.mrb[28].mxu0 }
0x19ab   :  { %v1198_v45 = vadd.f32 %v1192_v44, %v965_v43  ;;  %v1988_v46 = vpop.f32.mrb[29].mxu0 }
0x19ac   :  { %v1195_v47 = vpop.f32.mrb[30].mxu0 }
0x19ad   :  { %2150 = vtanh.f32 %v1198_v45  ;;  %v1989_v48 = vpop.f32.mrb[31].mxu0  ;;  %v1770_v50 = vmul.f32 -1.442695, %v1198_v45 }
0x19af   :  { %2152 = vpow2.f32 %v1770_v50 }
0x19b7   :  { %v2151_v49 = vpop.eup %2150 }
0x19b8   :  { %1208 = vrot.lane.b32.xlu1 %v2151_v49, %s2205_s18 }
0x19b9   :  { %v2153_v51 = vpop.eup %2152 }
0x19ba   :  { %v1202_v53 = vadd.f32 1.0, %v2153_v51 }
0x19bc   :  { %2154 = vrcp.f32 %v1202_v53  ;;  %v980_v53 = vadd.f32 %v2604_v38, %v2529_v30 }
0x19c6   :  { %v2155_v55 = vpop.eup %2154 }
0x19c7   :  { %v1206_v57 = vmul.f32 %v2155_v55, %v1138_v26 }
0x1a2a   :  { %v1209_v56 = vpop.permute.xlu1 %1208 }
0x1a2b   :  { %v1211_v9 = vmul.f32 %v2155_v55, %v1209_v56 }
0x1a2d   :  { %1213 = vrot.lane.b32.xlu0 %v1211_v9, %s2205_s18 }
0x1a9f   :  { %v1214_v59 = vpop.permute.xlu0 %1213 }
0x1aa0   :  { %v1216_v60 = vadd.f32 %v1214_v59, %v1206_v57 }
0x1aa2   :  { %2156 = vtanh.f32 %v1216_v60 }
0x1aac   :  { %v2157_v62 = vpop.eup %2156 }
0x1aad   :  { %1219 = vrot.lane.b32.xlu1 %v2157_v62, %s2205_s18 }
0x1b1f   :  { %v1220_v58 = vpop.permute.xlu1 %1219 }
0x1b20   :  { %v2616_v37 = vmul.f32 %v2155_v55, %v1220_v58 }
0x1b22   :  { %v1229_v63 = vpack.c.bf16 %v2616_v37, %v2616_v37 }
0x1b24   :  { %1231 = vrot.lane.b32.xlu0 %v1229_v63, %s2206_s3 }
0x1b96   :  { %v1232_v1 = vpop.permute.xlu0 %1231 }
0x1b97   :  { %1995 = vmatmul.mubr.msk.bf16.vlgmr.msra.gmra.mrb[28].mxu1 %vm61_vm0, %v1232_v1 }
0x1b98   :  { %2007 = vmatpush3.bf16.msra.mxu1 %v2493_v18  ;;  %2010 = vmatprep.mubr.msk.bf16.mxu1 %vm2203_vm1, %v2202_v2 }
0x1b99   :  { %2008 = vmatprep.subr.bf16.mxu1 %v2202_v2 }
0x1b9c   :  { %2009 = vmatpush3.bf16.msra.mxu1 %v2504_v22 }
0x1b9d   :  { %2022 = vmatprep.subr.bf16.mxu1 %v2202_v2 }
0x1c6a   :  { %v1270_v32 = vpop.f32.mrb[28].mxu1 }
0x1c6b   :  { %v1276_v20 = vadd.f32 %v1270_v32, %v970_v3  ;;  %v1996_v4 = vpop.f32.mrb[29].mxu1 }
0x1c6c   :  { %v1273_v10 = vpop.f32.mrb[30].mxu1 }
0x1c6d   :  { %2158 = vtanh.f32 %v1276_v20  ;;  %v1997_v11 = vpop.f32.mrb[31].mxu1  ;;  %v1772_v6 = vmul.f32 -1.442695, %v1276_v20 }
0x1c6f   :  { %2160 = vpow2.f32 %v1772_v6  ;;  %v985_v6 = vadd.f32 %v2529_v30, %v2610_v42 }
0x1c77   :  { %v2159_v12 = vpop.eup %2158 }
0x1c78   :  { %1286 = vrot.lane.b32.xlu1 %v2159_v12, %s2205_s18 }
0x1c79   :  { %v2161_v14 = vpop.eup %2160 }
0x1c7a   :  { %v1280_v17 = vadd.f32 1.0, %v2161_v14 }
0x1c7c   :  { %2162 = vrcp.f32 %v1280_v17 }
0x1c86   :  { %v2163_v0 = vpop.eup %2162 }
0x1c87   :  { %v1284_v23 = vmul.f32 %v2163_v0, %v1216_v60 }
0x1cea   :  { %v1287_v19 = vpop.permute.xlu1 %1286 }
0x1ceb   :  { %v1289_v21 = vmul.f32 %v2163_v0, %v1287_v19 }
0x1ced   :  { %1291 = vrot.lane.b32.xlu0 %v1289_v21, %s2205_s18 }
0x1d5f   :  { %v1292_v24 = vpop.permute.xlu0 %1291 }
0x1d60   :  { %v1294_v25 = vadd.f32 %v1292_v24, %v1284_v23 }
0x1d62   :  { %2164 = vtanh.f32 %v1294_v25 }
0x1d6c   :  { %v2165_v26 = vpop.eup %2164 }
0x1d6d   :  { %1297 = vrot.lane.b32.xlu1 %v2165_v26, %s2205_s18 }
0x1ddf   :  { %v1298_v27 = vpop.permute.xlu1 %1297 }
0x1de0   :  { %v2632_v28 = vmul.f32 %v2163_v0, %v1298_v27 }
0x1de2   :  { %v1307_v15 = vpack.c.bf16 %v2632_v28, %v2632_v28 }
0x1de4   :  { %1309 = vrot.lane.b32.xlu0 %v1307_v15, %s2206_s3 }
0x1e56   :  { %v1310_v8 = vpop.permute.xlu0 %1309 }
0x1e57   :  { %2003 = vmatmul.mubr.msk.bf16.vlgmr.msra.gmra.mrb[32].mxu0 %vm61_vm0, %v1310_v8 }
0x1e58   :  { %2015 = vmatpush3.bf16.msra.mxu0 %v2493_v18  ;;  %2018 = vmatprep.mubr.msk.bf16.mxu0 %vm2203_vm1, %v2202_v2 }
0x1e59   :  { %2016 = vmatprep.subr.bf16.mxu0 %v2202_v2 }
0x1e5c   :  { %2017 = vmatpush3.bf16.msra.mxu0 %v2504_v22 }
0x1f2a   :  { %v1348_v13 = vpop.f32.mrb[32].mxu0 }
0x1f2b   :  { %v1354_v54 = vadd.f32 %v1348_v13, %v975_v31  ;;  %v2004_v33 = vpop.f32.mrb[33].mxu0 }
0x1f2c   :  { %v1351_v40 = vpop.f32.mrb[34].mxu0 }
0x1f2d   :  { %2166 = vtanh.f32 %v1354_v54  ;;  %v2005_v34 = vpop.f32.mrb[35].mxu0  ;;  %v1774_v35 = vmul.f32 -1.442695, %v1354_v54 }
0x1f2f   :  { %2168 = vpow2.f32 %v1774_v35 }
0x1f37   :  { %v2167_v5 = vpop.eup %2166 }
0x1f38   :  { %1364 = vrot.lane.b32.xlu1 %v2167_v5, %s2205_s18  ;;  %v990_v5 = vadd.f32 %v2608_v41, %v2529_v30 }
0x1f39   :  { %v2169_v36 = vpop.eup %2168 }
0x1f3a   :  { %v1358_v16 = vadd.f32 1.0, %v2169_v36 }
0x1f3c   :  { %2170 = vrcp.f32 %v1358_v16 }
0x1f46   :  { %v2171_v7 = vpop.eup %2170 }
0x1f47   :  { %v1362_v39 = vmul.f32 %v2171_v7, %v1294_v25 }
0x1faa   :  { %v1365_v43 = vpop.permute.xlu1 %1364 }
0x1fab   :  { %v1367_v44 = vmul.f32 %v2171_v7, %v1365_v43 }
0x1fad   :  { %1369 = vrot.lane.b32.xlu0 %v1367_v44, %s2205_s18 }
0x201f   :  { %v1370_v45 = vpop.permute.xlu0 %1369 }
0x2020   :  { %v1372_v46 = vadd.f32 %v1370_v45, %v1362_v39 }
0x2022   :  { %2172 = vtanh.f32 %v1372_v46 }
0x202c   :  { %v2173_v47 = vpop.eup %2172 }
0x202d   :  { %1375 = vrot.lane.b32.xlu1 %v2173_v47, %s2205_s18 }
0x209f   :  { %v1376_v48 = vpop.permute.xlu1 %1375 }
0x20a0   :  { %v2648_v49 = vmul.f32 %v2171_v7, %v1376_v48 }
0x20a2   :  { %v1385_v50 = vpack.c.bf16 %v2648_v49, %v2648_v49 }
0x20a4   :  { %1387 = vrot.lane.b32.xlu0 %v1385_v50, %s2206_s3 }
0x2116   :  { %v1388_v51 = vpop.permute.xlu0 %1387 }
0x2117   :  { %2011 = vmatmul.mubr.msk.bf16.vlgmr.msra.gmra.mrb[32].mxu1 %vm61_vm0, %v1388_v51 }
0x2118   :  { %2023 = vmatpush3.bf16.msra.mxu1 %v2493_v18  ;;  %2026 = vmatprep.mubr.msk.bf16.mxu1 %vm2203_vm1, %v2202_v2 }
0x2119   :  { %2024 = vmatprep.subr.bf16.mxu1 %v2202_v2 }
0x211c   :  { %2025 = vmatpush3.bf16.msra.mxu1 %v2504_v22 }
0x21ea   :  { %v1426_v55 = vpop.f32.mrb[32].mxu1 }
0x21eb   :  { %v1432_v56 = vadd.f32 %v1426_v55, %v980_v53  ;;  %v2012_v9 = vpop.f32.mrb[33].mxu1  ;;  %v2207_v55 = vmov 0.0|0.0  }
0x21ec   :  { %v1429_v57 = vpop.f32.mrb[34].mxu1  ;;  %2057 = vmatprep.subr.bf16.mxu0 %v2207_v55  ;;  %v1627_v9 = vld [vmem:[%s2754_s7 + $0x8] sm:$0xff] }
0x21ed   :  { %2174 = vtanh.f32 %v1432_v56  ;;  %v2013_v59 = vpop.f32.mrb[35].mxu1  ;;  %v1776_v18 = vmul.f32 -1.442695, %v1432_v56  ;;  %v1626_v56 = vld [vmem:[%s2754_s7] sm:$0xff]  ;;  %v1628_v57 = vld [vmem:[%s2754_s7 + $0x10] sm:$0xff] }
0x21ee   :  { %v2058_v59 = vpack.c.bf16 %v1627_v9, %v1626_v56 }
0x21ef   :  { %2176 = vpow2.f32 %v1776_v18 }
0x21f7   :  { %v2175_v60 = vpop.eup %2174 }
0x21f8   :  { %1442 = vrot.lane.b32.xlu1 %v2175_v60, %s2205_s18  ;;  %v1629_v60 = vld [vmem:[%s2754_s7 + $0x18] sm:$0xff] }
0x21f9   :  { %v2177_v62 = vpop.eup %2176  ;;  %v2061_v18 = vpack.c.bf16 %v1629_v60, %v1628_v57 }
0x21fa   :  { %v1436_v58 = vadd.f32 1.0, %v2177_v62 }
0x21fc   :  { %2178 = vrcp.f32 %v1436_v58 }
0x2206   :  { %v2179_v63 = vpop.eup %2178 }
0x2207   :  { %v1440_v38 = vmul.f32 %v2179_v63, %v1372_v46 }
0x226a   :  { %v1443_v1 = vpop.permute.xlu1 %1442 }
0x226b   :  { %v1445_v22 = vmul.f32 %v2179_v63, %v1443_v1 }
0x226d   :  { %1447 = vrot.lane.b32.xlu0 %v1445_v22, %s2205_s18 }
0x22df   :  { %v1448_v3 = vpop.permute.xlu0 %1447 }
0x22e0   :  { %v1450_v32 = vadd.f32 %v1448_v3, %v1440_v38 }
0x22e2   :  { %2180 = vtanh.f32 %v1450_v32 }
0x22ec   :  { %v2181_v20 = vpop.eup %2180 }
0x22ed   :  { %1453 = vrot.lane.b32.xlu1 %v2181_v20, %s2205_s18 }
0x235f   :  { %v1454_v4 = vpop.permute.xlu1 %1453 }
0x2360   :  { %v2664_v10 = vmul.f32 %v2179_v63, %v1454_v4 }
0x2362   :  { %v1463_v11 = vpack.c.bf16 %v2664_v10, %v2664_v10 }
0x2364   :  { %1465 = vrot.lane.b32.xlu0 %v1463_v11, %s2206_s3 }
0x23d6   :  { %v1466_v12 = vpop.permute.xlu0 %1465 }
0x23d7   :  { %2019 = vmatmul.mubr.msk.bf16.vlgmr.msra.gmra.mrb[36].mxu0 %vm61_vm0, %v1466_v12 }
0x23d8   :  { %2038 = vmatprep.mubr.msk.f32.mxu0 %vm2203_vm1, %v2202_v2  ;;  %2059 = vmatpush3.bf16.msra.mxu0 %v2058_v59 }
0x23d9   :  { %2060 = vmatprep.subr.bf16.mxu0 %v2207_v55 }
0x23dc   :  { %2062 = vmatpush3.bf16.msra.mxu0 %v2061_v18 }
0x24aa   :  { %v1504_v14 = vpop.f32.mrb[36].mxu0 }
0x24ab   :  { %v1510_v17 = vadd.f32 %v1504_v14, %v985_v6  ;;  %v2020_v0 = vpop.f32.mrb[37].mxu0 }
0x24ac   :  { %v1507_v19 = vpop.f32.mrb[38].mxu0 }
0x24ad   :  { %2182 = vtanh.f32 %v1510_v17  ;;  %v2021_v21 = vpop.f32.mrb[39].mxu0  ;;  %v1778_v24 = vmul.f32 -1.442695, %v1510_v17 }
0x24af   :  { %2184 = vpow2.f32 %v1778_v24 }
0x24b7   :  { %v2183_v23 = vpop.eup %2182 }
0x24b8   :  { %1520 = vrot.lane.b32.xlu1 %v2183_v23, %s2205_s18 }
0x24b9   :  { %v2185_v25 = vpop.eup %2184 }
0x24ba   :  { %v1514_v26 = vadd.f32 1.0, %v2185_v25 }
0x24bc   :  { %2186 = vrcp.f32 %v1514_v26 }
0x24c6   :  { %v2187_v27 = vpop.eup %2186 }
0x24c7   :  { %v1518_v42 = vmul.f32 %v2187_v27, %v1450_v32 }
0x252a   :  { %v1521_v15 = vpop.permute.xlu1 %1520 }
0x252b   :  { %v1523_v2 = vmul.f32 %v2187_v27, %v1521_v15 }
0x252d   :  { %1525 = vrot.lane.b32.xlu0 %v1523_v2, %s2205_s18 }
0x259f   :  { %v1526_v8 = vpop.permute.xlu0 %1525 }
0x25a0   :  { %v1528_v31 = vadd.f32 %v1526_v8, %v1518_v42 }
0x25a2   :  { %2188 = vtanh.f32 %v1528_v31 }
0x25ac   :  { %v2189_v13 = vpop.eup %2188 }
0x25ad   :  { %1531 = vrot.lane.b32.xlu1 %v2189_v13, %s2205_s18 }
0x261f   :  { %v1532_v54 = vpop.permute.xlu1 %1531 }
0x2620   :  { %v2677_v33 = vmul.f32 %v2187_v27, %v1532_v54 }
0x2622   :  { %v1541_v40 = vpack.c.bf16 %v2677_v33, %v2677_v33 }
0x2624   :  { %1543 = vrot.lane.b32.xlu0 %v1541_v40, %s2206_s3 }
0x2696   :  { %v1544_v34 = vpop.permute.xlu0 %1543 }
0x2697   :  { %2027 = vmatmul.mubr.msk.bf16.vlgmr.msra.gmra.mrb[36].mxu1 %vm61_vm0, %v1544_v34 }
0x276a   :  { %v1582_v35 = vpop.f32.mrb[36].mxu1 }
0x276b   :  { %v1588_v36 = vadd.f32 %v1582_v35, %v990_v5  ;;  %v2028_v16 = vpop.f32.mrb[37].mxu1 }
0x276c   :  { %v1585_v7 = vpop.f32.mrb[38].mxu1 }
0x276d   :  { %2190 = vtanh.f32 %v1588_v36  ;;  %v2029_v43 = vpop.f32.mrb[39].mxu1  ;;  %v1780_v39 = vmul.f32 -1.442695, %v1588_v36 }
0x276f   :  { %2192 = vpow2.f32 %v1780_v39 }
0x2777   :  { %v2191_v44 = vpop.eup %2190 }
0x2778   :  { %1598 = vrot.lane.b32.xlu1 %v2191_v44, %s2205_s18 }
0x2779   :  { %v2193_v45 = vpop.eup %2192 }
0x277a   :  { %v1592_v46 = vadd.f32 1.0, %v2193_v45 }
0x277c   :  { %2194 = vrcp.f32 %v1592_v46 }
0x2786   :  { %v2195_v47 = vpop.eup %2194 }
0x2787   :  { %v1596_v30 = vmul.f32 %v2195_v47, %v1528_v31 }
0x27ea   :  { %v1599_v48 = vpop.permute.xlu1 %1598 }
0x27eb   :  { %v1601_v50 = vmul.f32 %v2195_v47, %v1599_v48 }
0x27ed   :  { %1603 = vrot.lane.b32.xlu0 %v1601_v50, %s2205_s18 }
0x285f   :  { %v1604_v41 = vpop.permute.xlu0 %1603 }
0x2860   :  { %v1606_v51 = vadd.f32 %v1604_v41, %v1596_v30 }
0x2862   :  { %2196 = vtanh.f32 %v1606_v51 }
0x286c   :  { %v2197_v53 = vpop.eup %2196 }
0x286d   :  { %1609 = vrot.lane.b32.xlu1 %v2197_v53, %s2205_s18  ;;  %s2208_s18 = smov 96  }
0x28df   :  { %v1610_v62 = vpop.permute.xlu1 %1609 }
0x28e0   :  { %v1612_v58 = vmul.f32 %v2195_v47, %v1610_v62 }
0x28e2   :  { %1614 = vrot.lane.b32.xlu0 %v1612_v58, %s2206_s3 }
0x28e6   :  { %835 = vrot.lane.b32.xlu0 %v2550_v61, %s2208_s18 }
0x28ea   :  { %1224 = vrot.lane.b32.xlu0 %v2616_v37, %s2206_s3 }
0x28ee   :  { %1380 = vrot.lane.b32.xlu0 %v2648_v49, %s2206_s3  ;;  %v1783_v49 = vld [vmem:[%s2756_s8] ss:$0 sm:$0xff] }
0x2954   :  { %v1615_v63 = vpop.permute.xlu0 %1614 }
0x2955   :  { %1617 = vst.msk [vmem:[#allocation3 + $0x38] sm:$0xff] %vm61_vm0, %v1615_v63  ;;  %1781 = vst.msk [vmem:[%s2753_s10 + $0x8] sm:$0xff] %vm61_vm0, %v1615_v63  ;;  %2039 = vmatmul.mubr.msk.f32.vlgmr.msra.gmra.mrb[40].mxu0 %vm61_vm0, %v1615_v63 }
0x2958   :  { %v836_v1 = vpop.permute.xlu0 %835 }
0x2959   :  { %838 = vst.msk [vmem:[%s2755_s11] sm:$0xff] %vm61_vm0, %v836_v1 }
0x295c   :  { %v1225_v61 = vpop.permute.xlu0 %1224 }
0x295d   :  { %1227 = vst.msk [vmem:[#allocation3 + $0x10] sm:$0xff] %vm61_vm0, %v1225_v61 }
0x2960   :  { %v1381_v37 = vpop.permute.xlu0 %1380 }
0x2961   :  { %1383 = vst.msk [vmem:[#allocation3 + $0x20] sm:$0xff] %vm61_vm0, %v1381_v37 }
0x2a28   :  { %v1705_v22 = vpop.f32.mrb[40].mxu0 }
0x2a29   :  { %v1706_v38 = vadd.f32 %v1783_v49, %v1705_v22  ;;  %v2040_v3 = vpop.f32.mrb[41].mxu0 }
0x2a2b   :  { %v1709_v32 = vsel %vm61_vm0, %v1706_v38, -inf }
0x2a2c   :  { %1710 = vmax.xlane.f32.xlu1 %v1709_v32 }
0x2a3d   :  { %1068 = vrot.lane.b32.xlu1 %v2539_v52, %s2206_s3 }
0x2a41   :  { %1146 = vrot.lane.b32.xlu1 %v2578_v29, %s2206_s3 }
0x2a45   :  { %1302 = vrot.lane.b32.xlu1 %v2632_v28, %s2206_s3 }
0x2a49   :  { %1458 = vrot.lane.b32.xlu1 %v2664_v10, %s2206_s3 }
0x2a4d   :  { %1621 = vrot.lane.b32.xlu1 %v1606_v51, %s2208_s18 }
0x2ab9   :  { %v1711_v20 = vpop.xlane.xlu1 %1710 }
0x2aba   :  { %v1712_v4 = vsub.f32 %v1706_v38, %v1711_v20 }
0x2abc   :  { %v1713_v11 = vmul.f32 1.442695, %v1712_v4 }
0x2abd   :  { %v1069_v12 = vpop.permute.xlu1 %1068 }
0x2abe   :  { %2198 = vpow2.f32 %v1713_v11  ;;  %1071 = vst.msk [vmem:[#allocation3] sm:$0xff] %vm61_vm0, %v1069_v12 }
0x2ac1   :  { %v1147_v6 = vpop.permute.xlu1 %1146 }
0x2ac2   :  { %1149 = vst.msk [vmem:[#allocation3 + $0x8] sm:$0xff] %vm61_vm0, %v1147_v6 }
0x2ac5   :  { %v1303_v52 = vpop.permute.xlu1 %1302 }
0x2ac6   :  { %1305 = vst.msk [vmem:[#allocation3 + $0x18] sm:$0xff] %vm61_vm0, %v1303_v52 }
0x2ac8   :  { %v2199_v29 = vpop.eup %2198 }
0x2ac9   :  { %v1459_v14 = vpop.permute.xlu1 %1458  ;;  %v1715_v28 = vsel %vm61_vm0, %v2199_v29, 0.0 }
0x2aca   :  { %1461 = vst.msk [vmem:[#allocation3 + $0x28] sm:$0xff] %vm61_vm0, %v1459_v14  ;;  %1716 = vadd.xlane.f32.xlu0 %v1715_v28 }
0x2acd   :  { %v1622_v10 = vpop.permute.xlu1 %1621 }
0x2ace   :  { %1782 = vst.msk [vmem:[%s2755_s11 + $0x8] sm:$0xff] %vm61_vm0, %v1622_v10 }
0x2ae0   :  { %1536 = vrot.lane.b32.xlu0 %v2677_v33, %s2206_s3 }
0x2b57   :  { %v1717_v17 = vpop.xlane.xlu0 %1716 }
0x2b58   :  { %2200 = vrcp.f32 %v1717_v17 }
0x2b5b   :  { %v1537_v0 = vpop.permute.xlu0 %1536 }
0x2b5c   :  { %1539 = vst.msk [vmem:[#allocation3 + $0x30] sm:$0xff] %vm61_vm0, %v1537_v0 }
0x2b62   :  { %v2201_v19 = vpop.eup %2200 }
0x2b63   :  { %v1719_v21 = vmul.f32 %v2201_v19, %v2199_v29 }
0x2b65   :  { %1720 = vst.msk [vmem:[%s2757_s9] sm:$0xff] %vm61_vm0, %v1719_v21 }

</bundles_post_ra>
